<compile_context>
chip_gen: v6e
topology: v6e:2x2x1
jax: 0.10.0
libtpu: 0.0.40
codegen_flags: <defaults>
</compile_context>

<pallas_src>
import functools
import math

import jax
import jax.numpy as jnp
from jax import lax
from jax.experimental import pallas as pl
from jax.experimental.pallas import tpu as pltpu


# ----------------------------------------------------------------------------
# Kernel: per-batch third-order attention (all heads) + fused output proj.
# ----------------------------------------------------------------------------
def _third_order_attn_kernel(x_ref, w_all_ref, b_all_ref, wp_ref, bp_ref,
                             o_ref, *, n_head):
    xb = x_ref[0]                                   # (T, C)
    T, C = xb.shape
    hd = C // n_head

    # Single wide projection matmul: (T, C) @ (C, 5C) + (1, 5C).
    # 1/sqrt(hd) is already folded into the q columns host-side.
    proj = (jnp.dot(xb, w_all_ref[...], preferred_element_type=jnp.float32)
            + b_all_ref[...])                       # (T, 5C)
    q_all = proj[:, 0 * C:1 * C]
    k0_all = proj[:, 1 * C:2 * C]
    k1_all = proj[:, 2 * C:3 * C]
    v0_all = proj[:, 3 * C:4 * C]
    v1_all = proj[:, 4 * C:5 * C]

    # 2-D causal additive bias: 0 where col <= row else -inf.  Broadcast to the
    # l- and m- axes at apply time instead of building (T,T,T) int32 masks.
    row = lax.broadcasted_iota(jnp.int32, (T, T), 0)
    col = lax.broadcasted_iota(jnp.int32, (T, T), 1)
    bias2d = jnp.where(col <= row, 0.0, -jnp.inf).astype(jnp.float32)   # (T, T)

    y_heads = []
    for h in range(n_head):                         # n_head is small & static
        sl = slice(h * hd, (h + 1) * hd)
        q, k0, k1 = q_all[:, sl], k0_all[:, sl], k1_all[:, sl]
        v0, v1 = v0_all[:, sl], v1_all[:, sl]

        # scores[k, l, m] = sum_d q[k,d] * k0[l,d] * k1[m,d]
        qk0 = q[:, None, :] * k0[None, :, :]                            # (T,T,hd)
        scores = lax.dot_general(
            qk0.reshape(T * T, hd), k1,
            dimension_numbers=(((1,), (1,)), ((), ())),
            preferred_element_type=jnp.float32).reshape(T, T, T)
        scores = scores + bias2d[:, :, None] + bias2d[:, None, :]

        # softmax over the joint (l, m) axes — unnormalized; masked entries
        # become exp(-inf) = 0.
        row_max = jnp.max(jnp.max(scores, axis=2, keepdims=True),
                          axis=1, keepdims=True)                        # (T,1,1)
        e = jnp.exp(scores - row_max)                                   # (T,T,T)
        denom = jnp.sum(jnp.sum(e, axis=2, keepdims=True),
                        axis=1, keepdims=True)                          # (T,1,1)

        # y[k, d] = (sum_{l,m} e[k,l,m] * v0[l,d] * v1[m,d]) / denom[k]
        t = jnp.dot(e.reshape(T * T, T), v1,
                    preferred_element_type=jnp.float32).reshape(T, T, hd)
        y_h = jnp.sum(t * v0[None, :, :], axis=1)                       # (T, hd)
        y_h = y_h * pl.reciprocal(denom[:, 0], approx=False)            # (T, 1)
        y_heads.append(y_h)

    # Lane-dense (T, C) slab directly in (B, T, C) layout, fused output proj.
    y = jnp.concatenate(y_heads, axis=-1)                               # (T, C)
    out = (jnp.dot(y, wp_ref[...], preferred_element_type=jnp.float32)
           + bp_ref[...])
    # TODO(synk): attn_drop / resid_drop are identity (inference / p_drop = 0).
    o_ref[0] = out.astype(o_ref.dtype)


# ----------------------------------------------------------------------------
# Wrapper
# ----------------------------------------------------------------------------
def causal_self_attention(x, params, n_head):
    B, T, C = x.shape
    hd = C // n_head
    scale = jnp.float32(1.0 / math.sqrt(hd))

    # Pack all five projections into one (C, 5C) weight / (1, 5C) bias so the
    # kernel can run a single wide MXU matmul.  Fold 1/sqrt(hd) into q.
    w_all = jnp.concatenate(
        [params["wq"] * scale, params["wk0"], params["wk1"],
         params["wv0"], params["wv1"]], axis=1)                 # (C, 5C)
    b_all = jnp.concatenate(
        [params["bq"] * scale, params["bk0"], params["bk1"],
         params["bv0"], params["bv1"]], axis=0)[None, :]        # (1, 5C)
    wp = params["wp"]                                           # (C, C)
    bp = params["bp"][None, :]                                  # (1, C)

    kernel = functools.partial(_third_order_attn_kernel, n_head=n_head)
    return pl.pallas_call(
        kernel,
        out_shape=jax.ShapeDtypeStruct((B, T, C), jnp.float32),
        grid=(B,),
        in_specs=[pl.BlockSpec((1, T, C), lambda b: (b, 0, 0)),
                  # constant index_map -> weights stay VMEM-resident across b
                  pl.BlockSpec((C, 5 * C), lambda b: (0, 0)),
                  pl.BlockSpec((1, 5 * C), lambda b: (0, 0)),
                  pl.BlockSpec((C, C), lambda b: (0, 0)),
                  pl.BlockSpec((1, C), lambda b: (0, 0))],
        out_specs=pl.BlockSpec((1, T, C), lambda b: (b, 0, 0)),
        compiler_params=pltpu.CompilerParams(
            dimension_semantics=("parallel",)),
    )(x, w_all, b_all, wp, bp)


# ----------------------------------------------------------------------------
# Pure-JAX reference (mirrors the PyTorch forward, dropout = identity)
# ----------------------------------------------------------------------------
def ref_forward(x, params, n_head):
    B, T, C = x.shape
    hd = C // n_head

    def heads(z):
        return z.reshape(B, T, n_head, hd).transpose(0, 2, 1, 3)

    q = heads(x @ params["wq"] + params["bq"])
    k0 = heads(x @ params["wk0"] + params["bk0"])
    k1 = heads(x @ params["wk1"] + params["bk1"])
    v0 = heads(x @ params["wv0"] + params["bv0"])
    v1 = heads(x @ params["wv1"] + params["bv1"])

    scores = jnp.einsum('bhkd,bhld,bhmd->bhklm', q, k0, k1) / math.sqrt(hd)
    tril = jnp.tril(jnp.ones((T, T), jnp.float32))
    mask = jnp.einsum('ij,ik->ijk', tril, tril)
    scores = jnp.where(mask == 0, -jnp.inf, scores)
    p = jax.nn.softmax(scores.reshape(B, n_head, T, T * T), axis=-1)
    p = p.reshape(B, n_head, T, T, T)
    value = jnp.einsum('bhkd,bhld->bhkld', v0, v1)
    y = jnp.einsum('bhklm,bhlmd->bhkd', p, value)
    y = y.transpose(0, 2, 1, 3).reshape(B, T, C)
    return y @ params["wp"] + params["bp"]


if __name__ == "__main__":
    # config: n_embd=32, n_head=4, block_size=T=8, batch=2 (dropout prob = 0)
    B, T, C, n_head = 2, 8, 32, 4

    key = jax.random.PRNGKey(0)
    keys = jax.random.split(key, 14)
    s = 1.0 / math.sqrt(C)

    # weights stored already transposed: y = x @ W + b, W: (in, out)
    params = {
        "wq":  jax.random.uniform(keys[0],  (C, C), jnp.float32, -s, s),
        "wk0": jax.random.uniform(keys[1],  (C, C), jnp.float32, -s, s),
        "wk1": jax.random.uniform(keys[2],  (C, C), jnp.float32, -s, s),
        "wv0": jax.random.uniform(keys[3],  (C, C), jnp.float32, -s, s),
        "wv1": jax.random.uniform(keys[4],  (C, C), jnp.float32, -s, s),
        "wp":  jax.random.uniform(keys[5],  (C, C), jnp.float32, -s, s),
        "bq":  jax.random.uniform(keys[6],  (C,),   jnp.float32, -s, s),
        "bk0": jax.random.uniform(keys[7],  (C,),   jnp.float32, -s, s),
        "bk1": jax.random.uniform(keys[8],  (C,),   jnp.float32, -s, s),
        "bv0": jax.random.uniform(keys[9],  (C,),   jnp.float32, -s, s),
        "bv1": jax.random.uniform(keys[10], (C,),   jnp.float32, -s, s),
        "bp":  jax.random.uniform(keys[11], (C,),   jnp.float32, -s, s),
    }
    x = jax.random.normal(keys[12], (B, T, C), jnp.float32)

    out = causal_self_attention(x, params, n_head)
    out = jax.block_until_ready(out)

    ref = ref_forward(x, params, n_head)
    assert out.shape == (B, T, C)
    assert jnp.allclose(out, ref, rtol=1e-4, atol=1e-4), \
        f"max abs err = {jnp.max(jnp.abs(out - ref))}"

    print("KERNEL_OK")
</pallas_src>

<mosaic_0001>
module attributes {stable_mosaic.version = 11 : i64} {
  func.func @_third_order_attn_kernel(%arg0: i32, %arg1: memref<1x8x32xf32, #tpu.memory_space<vmem>>, %arg2: memref<32x160xf32, #tpu.memory_space<vmem>>, %arg3: memref<1x160xf32, #tpu.memory_space<vmem>>, %arg4: memref<32x32xf32, #tpu.memory_space<vmem>>, %arg5: memref<1x32xf32, #tpu.memory_space<vmem>>, %arg6: memref<1x8x32xf32, #tpu.memory_space<vmem>>) attributes {dimension_semantics = [#tpu.dimension_semantics<parallel>], iteration_bounds = array<i64: 2>, scalar_prefetch = 0 : i64, scratch_operands = 0 : i64, tpu.core_type = #tpu.core_type<tc>, window_params = [{transform_indices = @transform_0, window_bounds = array<i64: 1, 8, 32>}, {pipeline_mode = #tpu.pipeline_mode<synchronous>, transform_indices = @transform_1, window_bounds = array<i64: 32, 160>}, {pipeline_mode = #tpu.pipeline_mode<synchronous>, transform_indices = @transform_2, window_bounds = array<i64: 1, 160>}, {pipeline_mode = #tpu.pipeline_mode<synchronous>, transform_indices = @transform_3, window_bounds = array<i64: 32, 32>}, {pipeline_mode = #tpu.pipeline_mode<synchronous>, transform_indices = @transform_4, window_bounds = array<i64: 1, 32>}, {transform_indices = @transform_5, window_bounds = array<i64: 1, 8, 32>}]} {
    %c0 = arith.constant 0 : index
    %c0_0 = arith.constant 0 : index
    %c0_1 = arith.constant 0 : index
    %0 = vector.load %arg1[%c0, %c0_0, %c0_1] : memref<1x8x32xf32, #tpu.memory_space<vmem>>, vector<1x8x32xf32>
    %1 = vector.shape_cast %0 : vector<1x8x32xf32> to vector<8x32xf32>
    %c0_2 = arith.constant 0 : index
    %c0_3 = arith.constant 0 : index
    %2 = vector.load %arg2[%c0_2, %c0_3] : memref<32x160xf32, #tpu.memory_space<vmem>>, vector<32x160xf32>
    %cst = arith.constant dense<0.000000e+00> : vector<8x160xf32>
    %3 = tpu.matmul %1, %2, %cst {dimension_numbers = #tpu.dot_dimension_numbers<[1], [0], [0], [1], [0, 0, 1, 1], [], []>} : vector<8x32xf32>, vector<32x160xf32>, vector<8x160xf32> -> vector<8x160xf32>
    %c0_4 = arith.constant 0 : index
    %c0_5 = arith.constant 0 : index
    %4 = vector.load %arg3[%c0_4, %c0_5] : memref<1x160xf32, #tpu.memory_space<vmem>>, vector<1x160xf32>
    %5 = vector.broadcast %4 : vector<1x160xf32> to vector<8x160xf32>
    %6 = arith.addf %3, %5 : vector<8x160xf32>
    %7 = vector.extract_strided_slice %6 {offsets = [0, 0], sizes = [8, 32], strides = [1, 1]} : vector<8x160xf32> to vector<8x32xf32>
    %8 = vector.extract_strided_slice %6 {offsets = [0, 32], sizes = [8, 32], strides = [1, 1]} : vector<8x160xf32> to vector<8x32xf32>
    %9 = vector.extract_strided_slice %6 {offsets = [0, 64], sizes = [8, 32], strides = [1, 1]} : vector<8x160xf32> to vector<8x32xf32>
    %10 = vector.extract_strided_slice %6 {offsets = [0, 96], sizes = [8, 32], strides = [1, 1]} : vector<8x160xf32> to vector<8x32xf32>
    %11 = vector.extract_strided_slice %6 {offsets = [0, 128], sizes = [8, 32], strides = [1, 1]} : vector<8x160xf32> to vector<8x32xf32>
    %12 = tpu.iota {dimensions = array<i32: 0>} : vector<8x8xi32>
    %13 = tpu.iota {dimensions = array<i32: 1>} : vector<8x8xi32>
    %14 = arith.cmpi sle, %13, %12 : vector<8x8xi32>
    %cst_6 = arith.constant 0.000000e+00 : f32
    %cst_7 = arith.constant 0xFF800000 : f32
    %15 = vector.broadcast %cst_6 : f32 to vector<8x8xf32>
    %16 = vector.broadcast %cst_7 : f32 to vector<8x8xf32>
    %17 = arith.select %14, %15, %16 : vector<8x8xi1>, vector<8x8xf32>
    %18 = vector.extract_strided_slice %7 {offsets = [0, 0], sizes = [8, 8], strides = [1, 1]} : vector<8x32xf32> to vector<8x8xf32>
    %19 = vector.extract_strided_slice %8 {offsets = [0, 0], sizes = [8, 8], strides = [1, 1]} : vector<8x32xf32> to vector<8x8xf32>
    %20 = vector.extract_strided_slice %9 {offsets = [0, 0], sizes = [8, 8], strides = [1, 1]} : vector<8x32xf32> to vector<8x8xf32>
    %21 = vector.extract_strided_slice %10 {offsets = [0, 0], sizes = [8, 8], strides = [1, 1]} : vector<8x32xf32> to vector<8x8xf32>
    %22 = vector.extract_strided_slice %11 {offsets = [0, 0], sizes = [8, 8], strides = [1, 1]} : vector<8x32xf32> to vector<8x8xf32>
    %23 = vector.shape_cast %18 : vector<8x8xf32> to vector<8x1x8xf32>
    %24 = vector.shape_cast %19 : vector<8x8xf32> to vector<1x8x8xf32>
    %25 = vector.broadcast %23 : vector<8x1x8xf32> to vector<8x8x8xf32>
    %26 = vector.broadcast %24 : vector<1x8x8xf32> to vector<8x8x8xf32>
    %27 = arith.mulf %25, %26 : vector<8x8x8xf32>
    %28 = vector.shape_cast %27 : vector<8x8x8xf32> to vector<64x8xf32>
    %cst_8 = arith.constant dense<0.000000e+00> : vector<64x8xf32>
    %29 = tpu.matmul %28, %20, %cst_8 {dimension_numbers = #tpu.dot_dimension_numbers<[1], [1], [0], [0], [0, 0, 1, 0], [], []>} : vector<64x8xf32>, vector<8x8xf32>, vector<64x8xf32> -> vector<64x8xf32>
    %30 = vector.shape_cast %29 : vector<64x8xf32> to vector<8x8x8xf32>
    %31 = vector.shape_cast %17 : vector<8x8xf32> to vector<8x8x1xf32>
    %32 = vector.broadcast %31 : vector<8x8x1xf32> to vector<8x8x8xf32>
    %33 = arith.addf %30, %32 : vector<8x8x8xf32>
    %34 = vector.shape_cast %17 : vector<8x8xf32> to vector<8x1x8xf32>
    %35 = vector.broadcast %34 : vector<8x1x8xf32> to vector<8x8x8xf32>
    %36 = arith.addf %33, %35 : vector<8x8x8xf32>
    %cst_9 = arith.constant dense<0xFF800000> : vector<8x8xf32>
    %37 = vector.multi_reduction <maximumf>, %36, %cst_9 [2] : vector<8x8x8xf32> to vector<8x8xf32>
    %38 = vector.shape_cast %37 : vector<8x8xf32> to vector<8x8x1xf32>
    %cst_10 = arith.constant dense<0xFF800000> : vector<8x1xf32>
    %39 = vector.multi_reduction <maximumf>, %38, %cst_10 [1] : vector<8x8x1xf32> to vector<8x1xf32>
    %40 = vector.shape_cast %39 : vector<8x1xf32> to vector<8x1x1xf32>
    %41 = vector.broadcast %40 : vector<8x1x1xf32> to vector<8x8x8xf32>
    %42 = arith.subf %36, %41 : vector<8x8x8xf32>
    %43 = math.exp %42 : vector<8x8x8xf32>
    %cst_11 = arith.constant dense<0.000000e+00> : vector<8x8xf32>
    %44 = vector.multi_reduction <add>, %43, %cst_11 [2] : vector<8x8x8xf32> to vector<8x8xf32>
    %45 = vector.shape_cast %44 : vector<8x8xf32> to vector<8x8x1xf32>
    %cst_12 = arith.constant dense<0.000000e+00> : vector<8x1xf32>
    %46 = vector.multi_reduction <add>, %45, %cst_12 [1] : vector<8x8x1xf32> to vector<8x1xf32>
    %47 = vector.shape_cast %46 : vector<8x1xf32> to vector<8x1x1xf32>
    %48 = vector.shape_cast %43 : vector<8x8x8xf32> to vector<64x8xf32>
    %cst_13 = arith.constant dense<0.000000e+00> : vector<64x8xf32>
    %49 = tpu.matmul %48, %22, %cst_13 {dimension_numbers = #tpu.dot_dimension_numbers<[1], [0], [0], [1], [0, 0, 1, 1], [], []>} : vector<64x8xf32>, vector<8x8xf32>, vector<64x8xf32> -> vector<64x8xf32>
    %50 = vector.shape_cast %49 : vector<64x8xf32> to vector<8x8x8xf32>
    %51 = vector.shape_cast %21 : vector<8x8xf32> to vector<1x8x8xf32>
    %52 = vector.broadcast %51 : vector<1x8x8xf32> to vector<8x8x8xf32>
    %53 = arith.mulf %50, %52 : vector<8x8x8xf32>
    %cst_14 = arith.constant dense<0.000000e+00> : vector<8x8xf32>
    %54 = vector.multi_reduction <add>, %53, %cst_14 [1] : vector<8x8x8xf32> to vector<8x8xf32>
    %55 = vector.shape_cast %47 : vector<8x1x1xf32> to vector<8x1xf32>
    %56 = tpu.reciprocal %55 : vector<8x1xf32> -> vector<8x1xf32>
    %57 = vector.broadcast %56 : vector<8x1xf32> to vector<8x8xf32>
    %58 = arith.mulf %54, %57 : vector<8x8xf32>
    %59 = vector.extract_strided_slice %7 {offsets = [0, 8], sizes = [8, 8], strides = [1, 1]} : vector<8x32xf32> to vector<8x8xf32>
    %60 = vector.extract_strided_slice %8 {offsets = [0, 8], sizes = [8, 8], strides = [1, 1]} : vector<8x32xf32> to vector<8x8xf32>
    %61 = vector.extract_strided_slice %9 {offsets = [0, 8], sizes = [8, 8], strides = [1, 1]} : vector<8x32xf32> to vector<8x8xf32>
    %62 = vector.extract_strided_slice %10 {offsets = [0, 8], sizes = [8, 8], strides = [1, 1]} : vector<8x32xf32> to vector<8x8xf32>
    %63 = vector.extract_strided_slice %11 {offsets = [0, 8], sizes = [8, 8], strides = [1, 1]} : vector<8x32xf32> to vector<8x8xf32>
    %64 = vector.shape_cast %59 : vector<8x8xf32> to vector<8x1x8xf32>
    %65 = vector.shape_cast %60 : vector<8x8xf32> to vector<1x8x8xf32>
    %66 = vector.broadcast %64 : vector<8x1x8xf32> to vector<8x8x8xf32>
    %67 = vector.broadcast %65 : vector<1x8x8xf32> to vector<8x8x8xf32>
    %68 = arith.mulf %66, %67 : vector<8x8x8xf32>
    %69 = vector.shape_cast %68 : vector<8x8x8xf32> to vector<64x8xf32>
    %cst_15 = arith.constant dense<0.000000e+00> : vector<64x8xf32>
    %70 = tpu.matmul %69, %61, %cst_15 {dimension_numbers = #tpu.dot_dimension_numbers<[1], [1], [0], [0], [0, 0, 1, 0], [], []>} : vector<64x8xf32>, vector<8x8xf32>, vector<64x8xf32> -> vector<64x8xf32>
    %71 = vector.shape_cast %70 : vector<64x8xf32> to vector<8x8x8xf32>
    %72 = vector.shape_cast %17 : vector<8x8xf32> to vector<8x8x1xf32>
    %73 = vector.broadcast %72 : vector<8x8x1xf32> to vector<8x8x8xf32>
    %74 = arith.addf %71, %73 : vector<8x8x8xf32>
    %75 = vector.shape_cast %17 : vector<8x8xf32> to vector<8x1x8xf32>
    %76 = vector.broadcast %75 : vector<8x1x8xf32> to vector<8x8x8xf32>
    %77 = arith.addf %74, %76 : vector<8x8x8xf32>
    %cst_16 = arith.constant dense<0xFF800000> : vector<8x8xf32>
    %78 = vector.multi_reduction <maximumf>, %77, %cst_16 [2] : vector<8x8x8xf32> to vector<8x8xf32>
    %79 = vector.shape_cast %78 : vector<8x8xf32> to vector<8x8x1xf32>
    %cst_17 = arith.constant dense<0xFF800000> : vector<8x1xf32>
    %80 = vector.multi_reduction <maximumf>, %79, %cst_17 [1] : vector<8x8x1xf32> to vector<8x1xf32>
    %81 = vector.shape_cast %80 : vector<8x1xf32> to vector<8x1x1xf32>
    %82 = vector.broadcast %81 : vector<8x1x1xf32> to vector<8x8x8xf32>
    %83 = arith.subf %77, %82 : vector<8x8x8xf32>
    %84 = math.exp %83 : vector<8x8x8xf32>
    %cst_18 = arith.constant dense<0.000000e+00> : vector<8x8xf32>
    %85 = vector.multi_reduction <add>, %84, %cst_18 [2] : vector<8x8x8xf32> to vector<8x8xf32>
    %86 = vector.shape_cast %85 : vector<8x8xf32> to vector<8x8x1xf32>
    %cst_19 = arith.constant dense<0.000000e+00> : vector<8x1xf32>
    %87 = vector.multi_reduction <add>, %86, %cst_19 [1] : vector<8x8x1xf32> to vector<8x1xf32>
    %88 = vector.shape_cast %87 : vector<8x1xf32> to vector<8x1x1xf32>
    %89 = vector.shape_cast %84 : vector<8x8x8xf32> to vector<64x8xf32>
    %cst_20 = arith.constant dense<0.000000e+00> : vector<64x8xf32>
    %90 = tpu.matmul %89, %63, %cst_20 {dimension_numbers = #tpu.dot_dimension_numbers<[1], [0], [0], [1], [0, 0, 1, 1], [], []>} : vector<64x8xf32>, vector<8x8xf32>, vector<64x8xf32> -> vector<64x8xf32>
    %91 = vector.shape_cast %90 : vector<64x8xf32> to vector<8x8x8xf32>
    %92 = vector.shape_cast %62 : vector<8x8xf32> to vector<1x8x8xf32>
    %93 = vector.broadcast %92 : vector<1x8x8xf32> to vector<8x8x8xf32>
    %94 = arith.mulf %91, %93 : vector<8x8x8xf32>
    %cst_21 = arith.constant dense<0.000000e+00> : vector<8x8xf32>
    %95 = vector.multi_reduction <add>, %94, %cst_21 [1] : vector<8x8x8xf32> to vector<8x8xf32>
    %96 = vector.shape_cast %88 : vector<8x1x1xf32> to vector<8x1xf32>
    %97 = tpu.reciprocal %96 : vector<8x1xf32> -> vector<8x1xf32>
    %98 = vector.broadcast %97 : vector<8x1xf32> to vector<8x8xf32>
    %99 = arith.mulf %95, %98 : vector<8x8xf32>
    %100 = vector.extract_strided_slice %7 {offsets = [0, 16], sizes = [8, 8], strides = [1, 1]} : vector<8x32xf32> to vector<8x8xf32>
    %101 = vector.extract_strided_slice %8 {offsets = [0, 16], sizes = [8, 8], strides = [1, 1]} : vector<8x32xf32> to vector<8x8xf32>
    %102 = vector.extract_strided_slice %9 {offsets = [0, 16], sizes = [8, 8], strides = [1, 1]} : vector<8x32xf32> to vector<8x8xf32>
    %103 = vector.extract_strided_slice %10 {offsets = [0, 16], sizes = [8, 8], strides = [1, 1]} : vector<8x32xf32> to vector<8x8xf32>
    %104 = vector.extract_strided_slice %11 {offsets = [0, 16], sizes = [8, 8], strides = [1, 1]} : vector<8x32xf32> to vector<8x8xf32>
    %105 = vector.shape_cast %100 : vector<8x8xf32> to vector<8x1x8xf32>
    %106 = vector.shape_cast %101 : vector<8x8xf32> to vector<1x8x8xf32>
    %107 = vector.broadcast %105 : vector<8x1x8xf32> to vector<8x8x8xf32>
    %108 = vector.broadcast %106 : vector<1x8x8xf32> to vector<8x8x8xf32>
    %109 = arith.mulf %107, %108 : vector<8x8x8xf32>
    %110 = vector.shape_cast %109 : vector<8x8x8xf32> to vector<64x8xf32>
    %cst_22 = arith.constant dense<0.000000e+00> : vector<64x8xf32>
    %111 = tpu.matmul %110, %102, %cst_22 {dimension_numbers = #tpu.dot_dimension_numbers<[1], [1], [0], [0], [0, 0, 1, 0], [], []>} : vector<64x8xf32>, vector<8x8xf32>, vector<64x8xf32> -> vector<64x8xf32>
    %112 = vector.shape_cast %111 : vector<64x8xf32> to vector<8x8x8xf32>
    %113 = vector.shape_cast %17 : vector<8x8xf32> to vector<8x8x1xf32>
    %114 = vector.broadcast %113 : vector<8x8x1xf32> to vector<8x8x8xf32>
    %115 = arith.addf %112, %114 : vector<8x8x8xf32>
    %116 = vector.shape_cast %17 : vector<8x8xf32> to vector<8x1x8xf32>
    %117 = vector.broadcast %116 : vector<8x1x8xf32> to vector<8x8x8xf32>
    %118 = arith.addf %115, %117 : vector<8x8x8xf32>
    %cst_23 = arith.constant dense<0xFF800000> : vector<8x8xf32>
    %119 = vector.multi_reduction <maximumf>, %118, %cst_23 [2] : vector<8x8x8xf32> to vector<8x8xf32>
    %120 = vector.shape_cast %119 : vector<8x8xf32> to vector<8x8x1xf32>
    %cst_24 = arith.constant dense<0xFF800000> : vector<8x1xf32>
    %121 = vector.multi_reduction <maximumf>, %120, %cst_24 [1] : vector<8x8x1xf32> to vector<8x1xf32>
    %122 = vector.shape_cast %121 : vector<8x1xf32> to vector<8x1x1xf32>
    %123 = vector.broadcast %122 : vector<8x1x1xf32> to vector<8x8x8xf32>
    %124 = arith.subf %118, %123 : vector<8x8x8xf32>
    %125 = math.exp %124 : vector<8x8x8xf32>
    %cst_25 = arith.constant dense<0.000000e+00> : vector<8x8xf32>
    %126 = vector.multi_reduction <add>, %125, %cst_25 [2] : vector<8x8x8xf32> to vector<8x8xf32>
    %127 = vector.shape_cast %126 : vector<8x8xf32> to vector<8x8x1xf32>
    %cst_26 = arith.constant dense<0.000000e+00> : vector<8x1xf32>
    %128 = vector.multi_reduction <add>, %127, %cst_26 [1] : vector<8x8x1xf32> to vector<8x1xf32>
    %129 = vector.shape_cast %128 : vector<8x1xf32> to vector<8x1x1xf32>
    %130 = vector.shape_cast %125 : vector<8x8x8xf32> to vector<64x8xf32>
    %cst_27 = arith.constant dense<0.000000e+00> : vector<64x8xf32>
    %131 = tpu.matmul %130, %104, %cst_27 {dimension_numbers = #tpu.dot_dimension_numbers<[1], [0], [0], [1], [0, 0, 1, 1], [], []>} : vector<64x8xf32>, vector<8x8xf32>, vector<64x8xf32> -> vector<64x8xf32>
    %132 = vector.shape_cast %131 : vector<64x8xf32> to vector<8x8x8xf32>
    %133 = vector.shape_cast %103 : vector<8x8xf32> to vector<1x8x8xf32>
    %134 = vector.broadcast %133 : vector<1x8x8xf32> to vector<8x8x8xf32>
    %135 = arith.mulf %132, %134 : vector<8x8x8xf32>
    %cst_28 = arith.constant dense<0.000000e+00> : vector<8x8xf32>
    %136 = vector.multi_reduction <add>, %135, %cst_28 [1] : vector<8x8x8xf32> to vector<8x8xf32>
    %137 = vector.shape_cast %129 : vector<8x1x1xf32> to vector<8x1xf32>
    %138 = tpu.reciprocal %137 : vector<8x1xf32> -> vector<8x1xf32>
    %139 = vector.broadcast %138 : vector<8x1xf32> to vector<8x8xf32>
    %140 = arith.mulf %136, %139 : vector<8x8xf32>
    %141 = vector.extract_strided_slice %7 {offsets = [0, 24], sizes = [8, 8], strides = [1, 1]} : vector<8x32xf32> to vector<8x8xf32>
    %142 = vector.extract_strided_slice %8 {offsets = [0, 24], sizes = [8, 8], strides = [1, 1]} : vector<8x32xf32> to vector<8x8xf32>
    %143 = vector.extract_strided_slice %9 {offsets = [0, 24], sizes = [8, 8], strides = [1, 1]} : vector<8x32xf32> to vector<8x8xf32>
    %144 = vector.extract_strided_slice %10 {offsets = [0, 24], sizes = [8, 8], strides = [1, 1]} : vector<8x32xf32> to vector<8x8xf32>
    %145 = vector.extract_strided_slice %11 {offsets = [0, 24], sizes = [8, 8], strides = [1, 1]} : vector<8x32xf32> to vector<8x8xf32>
    %146 = vector.shape_cast %141 : vector<8x8xf32> to vector<8x1x8xf32>
    %147 = vector.shape_cast %142 : vector<8x8xf32> to vector<1x8x8xf32>
    %148 = vector.broadcast %146 : vector<8x1x8xf32> to vector<8x8x8xf32>
    %149 = vector.broadcast %147 : vector<1x8x8xf32> to vector<8x8x8xf32>
    %150 = arith.mulf %148, %149 : vector<8x8x8xf32>
    %151 = vector.shape_cast %150 : vector<8x8x8xf32> to vector<64x8xf32>
    %cst_29 = arith.constant dense<0.000000e+00> : vector<64x8xf32>
    %152 = tpu.matmul %151, %143, %cst_29 {dimension_numbers = #tpu.dot_dimension_numbers<[1], [1], [0], [0], [0, 0, 1, 0], [], []>} : vector<64x8xf32>, vector<8x8xf32>, vector<64x8xf32> -> vector<64x8xf32>
    %153 = vector.shape_cast %152 : vector<64x8xf32> to vector<8x8x8xf32>
    %154 = vector.shape_cast %17 : vector<8x8xf32> to vector<8x8x1xf32>
    %155 = vector.broadcast %154 : vector<8x8x1xf32> to vector<8x8x8xf32>
    %156 = arith.addf %153, %155 : vector<8x8x8xf32>
    %157 = vector.shape_cast %17 : vector<8x8xf32> to vector<8x1x8xf32>
    %158 = vector.broadcast %157 : vector<8x1x8xf32> to vector<8x8x8xf32>
    %159 = arith.addf %156, %158 : vector<8x8x8xf32>
    %cst_30 = arith.constant dense<0xFF800000> : vector<8x8xf32>
    %160 = vector.multi_reduction <maximumf>, %159, %cst_30 [2] : vector<8x8x8xf32> to vector<8x8xf32>
    %161 = vector.shape_cast %160 : vector<8x8xf32> to vector<8x8x1xf32>
    %cst_31 = arith.constant dense<0xFF800000> : vector<8x1xf32>
    %162 = vector.multi_reduction <maximumf>, %161, %cst_31 [1] : vector<8x8x1xf32> to vector<8x1xf32>
    %163 = vector.shape_cast %162 : vector<8x1xf32> to vector<8x1x1xf32>
    %164 = vector.broadcast %163 : vector<8x1x1xf32> to vector<8x8x8xf32>
    %165 = arith.subf %159, %164 : vector<8x8x8xf32>
    %166 = math.exp %165 : vector<8x8x8xf32>
    %cst_32 = arith.constant dense<0.000000e+00> : vector<8x8xf32>
    %167 = vector.multi_reduction <add>, %166, %cst_32 [2] : vector<8x8x8xf32> to vector<8x8xf32>
    %168 = vector.shape_cast %167 : vector<8x8xf32> to vector<8x8x1xf32>
    %cst_33 = arith.constant dense<0.000000e+00> : vector<8x1xf32>
    %169 = vector.multi_reduction <add>, %168, %cst_33 [1] : vector<8x8x1xf32> to vector<8x1xf32>
    %170 = vector.shape_cast %169 : vector<8x1xf32> to vector<8x1x1xf32>
    %171 = vector.shape_cast %166 : vector<8x8x8xf32> to vector<64x8xf32>
    %cst_34 = arith.constant dense<0.000000e+00> : vector<64x8xf32>
    %172 = tpu.matmul %171, %145, %cst_34 {dimension_numbers = #tpu.dot_dimension_numbers<[1], [0], [0], [1], [0, 0, 1, 1], [], []>} : vector<64x8xf32>, vector<8x8xf32>, vector<64x8xf32> -> vector<64x8xf32>
    %173 = vector.shape_cast %172 : vector<64x8xf32> to vector<8x8x8xf32>
    %174 = vector.shape_cast %144 : vector<8x8xf32> to vector<1x8x8xf32>
    %175 = vector.broadcast %174 : vector<1x8x8xf32> to vector<8x8x8xf32>
    %176 = arith.mulf %173, %175 : vector<8x8x8xf32>
    %cst_35 = arith.constant dense<0.000000e+00> : vector<8x8xf32>
    %177 = vector.multi_reduction <add>, %176, %cst_35 [1] : vector<8x8x8xf32> to vector<8x8xf32>
    %178 = vector.shape_cast %170 : vector<8x1x1xf32> to vector<8x1xf32>
    %179 = tpu.reciprocal %178 : vector<8x1xf32> -> vector<8x1xf32>
    %180 = vector.broadcast %179 : vector<8x1xf32> to vector<8x8xf32>
    %181 = arith.mulf %177, %180 : vector<8x8xf32>
    %182 = tpu.concatenate %58, %99, %140, %181 in 1 : vector<8x8xf32>, vector<8x8xf32>, vector<8x8xf32>, vector<8x8xf32> -> vector<8x32xf32>
    %c0_36 = arith.constant 0 : index
    %c0_37 = arith.constant 0 : index
    %183 = vector.load %arg4[%c0_36, %c0_37] : memref<32x32xf32, #tpu.memory_space<vmem>>, vector<32x32xf32>
    %cst_38 = arith.constant dense<0.000000e+00> : vector<8x32xf32>
    %184 = tpu.matmul %182, %183, %cst_38 {dimension_numbers = #tpu.dot_dimension_numbers<[1], [0], [0], [1], [0, 0, 1, 1], [], []>} : vector<8x32xf32>, vector<32x32xf32>, vector<8x32xf32> -> vector<8x32xf32>
    %c0_39 = arith.constant 0 : index
    %c0_40 = arith.constant 0 : index
    %185 = vector.load %arg5[%c0_39, %c0_40] : memref<1x32xf32, #tpu.memory_space<vmem>>, vector<1x32xf32>
    %186 = vector.broadcast %185 : vector<1x32xf32> to vector<8x32xf32>
    %187 = arith.addf %184, %186 : vector<8x32xf32>
    %c0_41 = arith.constant 0 : index
    %c0_42 = arith.constant 0 : index
    %c0_43 = arith.constant 0 : index
    %188 = vector.load %arg6[%c0_41, %c0_42, %c0_43] : memref<1x8x32xf32, #tpu.memory_space<vmem>>, vector<1x8x32xf32>
    %189 = vector.shape_cast %188 : vector<1x8x32xf32> to vector<8x32xf32>
    %190 = vector.shape_cast %187 : vector<8x32xf32> to vector<1x8x32xf32>
    tpu.vector_store %arg6[%c0_41, %c0_42, %c0_43], %190 {strides = array<i32>} : memref<1x8x32xf32, #tpu.memory_space<vmem>>, vector<1x8x32xf32>,
    return
  }
  func.func @transform_0(%arg0: i32) -> (i32, i32, i32) {
    %c0_i32 = arith.constant 0 : i32
    %c0_i32_0 = arith.constant 0 : i32
    %c0_i32_1 = arith.constant 0 : i32
    return %arg0, %c0_i32, %c0_i32_0 : i32, i32, i32
  }
  func.func @transform_1(%arg0: i32) -> (i32, i32) {
    %c0_i32 = arith.constant 0 : i32
    %c0_i32_0 = arith.constant 0 : i32
    %c0_i32_1 = arith.constant 0 : i32
    return %c0_i32, %c0_i32_0 : i32, i32
  }
  func.func @transform_2(%arg0: i32) -> (i32, i32) {
    %c0_i32 = arith.constant 0 : i32
    %c0_i32_0 = arith.constant 0 : i32
    %c0_i32_1 = arith.constant 0 : i32
    return %c0_i32, %c0_i32_0 : i32, i32
  }
  func.func @transform_3(%arg0: i32) -> (i32, i32) {
    %c0_i32 = arith.constant 0 : i32
    %c0_i32_0 = arith.constant 0 : i32
    %c0_i32_1 = arith.constant 0 : i32
    return %c0_i32, %c0_i32_0 : i32, i32
  }
  func.func @transform_4(%arg0: i32) -> (i32, i32) {
    %c0_i32 = arith.constant 0 : i32
    %c0_i32_0 = arith.constant 0 : i32
    %c0_i32_1 = arith.constant 0 : i32
    return %c0_i32, %c0_i32_0 : i32, i32
  }
  func.func @transform_5(%arg0: i32) -> (i32, i32, i32) {
    %c0_i32 = arith.constant 0 : i32
    %c0_i32_0 = arith.constant 0 : i32
    %c0_i32_1 = arith.constant 0 : i32
    return %arg0, %c0_i32, %c0_i32_0 : i32, i32, i32
  }
}

</mosaic_0001>

<bundles_post_ra>
// kernel: tpu_custom_call.1
= control target key start
LH: loop header
LB: loop body
LE: loop exit
PB: predicated region body
PF: predicated region fallthrough
CT: control target
= control target key end

     0   :  { %10 = vsyncpa [#allocation3], 0  ;;  %s4665_s0 = inlined_call_operand.hbm [shape: f32[2,8,32], index: 0, kind: input, shape index: {}]   ;;  %s4666_s1 = inlined_call_operand.hbm [shape: f32[32,160], index: 1, kind: input, shape index: {}]   ;;  %s4667_s2 = inlined_call_operand.vmem [shape: f32[1,160], index: 2, kind: input, shape index: {}]   ;;  %s4668_s3 = inlined_call_operand.hbm [shape: f32[32,32], index: 3, kind: input, shape index: {}]   ;;  %s4669_s4 = inlined_call_operand.vmem [shape: f32[1,32], index: 4, kind: input, shape index: {}]   ;;  %s4670_s5 = inlined_call_operand.hbm [shape: f32[2,8,32], index: 5, kind: output, shape index: {}]  }
   0x1   :  { %12 = vsyncpa [#allocation3 + $0x1], 0 }
   0x2   :  { %13 = vsyncpa [#allocation6], 0 }
   0x3   :  { %14 = vsyncpa [#allocation4], 0 }
   0x4   :  { %16 = vsyncpa [#allocation4 + $0x1], 0  ;;  %s3745_s18 = smov 0   ;;  %s3747_s19 = smov 0  }
   0x5   :  { %s3749_s20 = smov 0   ;;  %s3751_s21 = smov 0  }
   0x6 LB: > { %s3766_s22 = sadd.s32 4294967295, %s3689_s21   ;;  %s3039_s23 = sadd.s32 4294967294, %s3689_s21   ;;  %s3689_s21 = sphi %s3751_s21, %s4692_s21   ;;  %s3685_s20 = sphi %s3749_s20, %s4691_s20   ;;  %s3681_s19 = sphi %s3747_s19, %s4690_s19   ;;  %s3677_s18 = sphi %s3745_s18, %s4689_s18  }
   0x7   : > { %p42_p0 = scmp.ne.s32.totalorder %s3681_s19, %s3677_s18  ;;  %p4671_p1 = scmp.eq.s32.totalorder %s3766_s22, 0 }
   0x8   : > { %p156_p3 = scmp.eq.s32.totalorder %s3039_s23, 1  ;;  %p3040_p5 = scmp.ge.s32.totalorder %s3689_s21, 1 }
   0x9   : > { %p3775_p4 = por %p4671_p1, %p42_p0  ;;  %p163_p7 = scmp.lt.s32.totalorder %s3689_s21, 3 }
   0xa   : > { %p3780_p6 = por %p156_p3, %p42_p0  ;;  %s3691_s27 = smov [#allocation5]  }
   0xb   : > { %s4675_s24 = scalar_select %p3775_p4, 1, 0 }
   0xc   : > { %s4676_s25 = scalar_select %p3780_p6, 1, 0 }
   0xd   : > { %p3785_p8 = pnand %p3040_p5, %p163_p7  ;;  %s175_s28 = sshll.u32 %s3691_s27, 4  ;;  %s176_s28 = int_to_ptr.vmem [resolvable:$true] %s175_s28 }
   0xe   : > { %s3692_s30 = smov [#allocation7]   ;;  %s3552_s7 = scalar_lea.vmem %s176_s28, 1024 }
   0xf   : > { %s4677_s26 = scalar_select %p3785_p8, 1, 0 }
  0x10   : > { %p3338_p9 = pneg %p3785_p8  ;;  %s191_s6 = sshll.u32 %s3692_s30, 4  ;;  %s192_s6 = int_to_ptr.vmem [resolvable:$true] %s191_s6 }
  0x11   : > { %p3553_p13 = scmp.ne.s32.totalorder %s176_s28, %s3552_s7  ;;  %p3560_p5 = scmp.lt.s32.totalorder %s176_s28, %s176_s28 }
  0x12   : > { %p3794_p11 = pnand %p3338_p9, %p4671_p1  ;;  %p3561_p7 = scmp.lt.s32.totalorder %s3552_s7, %s3552_s7 }
  0x14   : > { %p3543_p12 = pneg %p3794_p11  ;;  %p3562_p10 = por %p3561_p7, %p3560_p5 }
  0x16   : > { %p3555_p0 = pnand %p3553_p13, %p3543_p12 }
  0x18   : > { %p3556_p3 = pneg %p3555_p0 }
  0x1a   : > { %p3563_p9 = pnand %p3562_p10, %p3556_p3 }
  0x1c   : > { %3566 = shalt.err (!%p3563_p9)
}
  0x1d   : > { %s3693_s8 = smov 256   ;;  %s3694_s9 = smov 16  }
  0x1e   : > { %3341 = dma.hbm_to_vmem [thread:$0]  (!%p3794_p11), %s4666_s1, 1024, %s176_s28, [#allocation6], %s3693_s8, %s3693_s8, %s3694_s9  }
  0x1f   : > { %s3578_s12 = scalar_lea.vmem %s192_s6, 512  ;;  %p3586_p2 = scmp.lt.s32.totalorder %s192_s6, %s192_s6 }
  0x20   : > { %p3579_p1 = scmp.ne.s32.totalorder %s192_s6, %s3578_s12  ;;  %p3587_p6 = scmp.lt.s32.totalorder %s3578_s12, %s3578_s12 }
  0x22   : > { %p3581_p13 = pnand %p3579_p1, %p3543_p12  ;;  %p3588_p5 = por %p3587_p6, %p3586_p2 }
  0x24   : > { %p3582_p0 = pneg %p3581_p13 }
  0x26   : > { %p3589_p10 = pnand %p3588_p5, %p3582_p0 }
  0x28   : > { %3592 = shalt.err (!%p3589_p10)
}
  0x29   : > { %s3695_s13 = smov 128   ;;  %s3696_s14 = smov 8  }
  0x2a   : > { %3344 = dma.hbm_to_vmem [thread:$0]  (!%p3794_p11), %s4668_s3, 512, %s192_s6, [#allocation6], %s3695_s13, %s3695_s13, %s3696_s14  }
  0x2b   : > { %s3817_s17 = sadd.s32 1, %s3689_s21   ;;  %s29_s27 = sadd.s32 1, %s3685_s20 }
  0x2c   : > { %s26_s23 = ssub.s32 %s3689_s21, %s3817_s17  ;;  %p36_p2 = scmp.ne.s32.totalorder %s3685_s20, %s3681_s19 }
  0x2d   : > { %p27_p1 = scmp.eq.s32.totalorder %s26_s23, 0  ;;  %p37_p6 = scmp.eq.s32.totalorder %s3689_s21, 0 }
  0x2e   : > { %p4679_p3 = scmp.eq.s32.totalorder %s3766_s22, 1  ;;  %p3355_p9 = scmp.lt.s32.totalorder %s3689_s21, 2 }
  0x2f   : > { %s3826_s28 = scalar_select %p27_p1, %s3685_s20, %s29_s27  }
  0x30   : > { %p38_p12 = por %p37_p6, %p36_p2  ;;  %p3830_p7 = por %p4679_p3, %p36_p2 }
  0x31   : > { %s208_s29 = sand.u32 1, %s3685_s20   ;;  %s3045_s6 = sshll.u32 %s3689_s21, 7 }
  0x32   : > { %s4680_s30 = scalar_select %p3830_p7, 1, 0 }
  0x33   : > { %s3044_s7 = sshll.u32 %s208_s29, 3  ;;  %s3840_s10 = scalar_lea.hbm %s4665_s0, %s3045_s6 }
  0x34   : > { %s212_s11 = scalar_lea.vmem [#allocation2], %s3044_s7  ;;  %p3842_p11 = pnand %p3355_p9, %p38_p12 }
  0x35   : > { %s219_s12 = sshll.u32 %s212_s11, 4  ;;  %s209_s14 = scalar_lea.sflag [#allocation3], %s208_s29  ;;  %s220_s12 = int_to_ptr.vmem [resolvable:$true] %s219_s12 }
  0x36   : > { %s3593_s15 = scalar_lea.hbm %s3840_s10, 128  ;;  %p3595_p0 = pneg %p3842_p11 }
  0x37   : > { %p3594_p13 = scmp.ne.s32.totalorder %s3840_s10, %s3593_s15  ;;  %s3598_s27 = scalar_lea.hbm %s4665_s0, 256 }
  0x38   : > { %p3599_p1 = scmp.lt.s32.totalorder %s3840_s10, %s4665_s0  ;;  %p3600_p2 = scmp.lt.s32.totalorder %s3598_s27, %s3593_s15 }
  0x39   : > { %p3596_p5 = pnand %p3595_p0, %p3594_p13 }
  0x3a   : > { %p3601_p6 = por %p3600_p2, %p3599_p1 }
  0x3b   : > { %p3597_p10 = pneg %p3596_p5 }
  0x3d   : > { %p3602_p12 = pnand %p3601_p6, %p3597_p10 }
  0x3f   : > { %3605 = shalt.err (!%p3602_p12)
}
  0x40   : > { %s3606_s8 = scalar_lea.vmem %s220_s12, 128  ;;  %s3697_s29 = smov [#allocation2]  }
  0x41   : > { %p3607_p3 = scmp.ne.s32.totalorder %s220_s12, %s3606_s8  ;;  %s3611_s9 = sshll.u32 %s3697_s29, 4  ;;  %s3612_s9 = int_to_ptr.vmem [resolvable:$false] %s3611_s9 }
  0x42   : > { %s3613_s11 = scalar_lea.vmem %s3612_s9, 256  ;;  %p3614_p13 = scmp.lt.s32.totalorder %s220_s12, %s3612_s9 }
  0x43   : > { %p3609_p9 = pnand %p3607_p3, %p3595_p0  ;;  %p3615_p5 = scmp.lt.s32.totalorder %s3613_s11, %s3606_s8 }
  0x45   : > { %p3610_p7 = pneg %p3609_p9  ;;  %p3616_p4 = por %p3615_p5, %p3614_p13 }
  0x47   : > { %p3617_p8 = pnand %p3616_p4, %p3610_p7 }
  0x49   : > { %3620 = shalt.err (!%p3617_p8)
}
  0x4a   : > { %3348 = dma.hbm_to_vmem [thread:$0]  (!%p3842_p11), %s3840_s10, 128, %s220_s12, %s209_s14  }
  0x4b   : > { %p4682_p10 = scmp.ne.s32.totalorder %s4677_s26, 0 }
  0x4c   : > { %s3863_s15 = sand.u32 (!%p4682_p10), 1, %s3681_s19   ;;  %p4683_p4 = scmp.ne.s32.totalorder (!%p4682_p10), %s4675_s24, 0 }
  0x4d   : > { %228 = sbr.rel (%p4682_p10) target bundleno = 1501 (0x5dd), region = 40  ;;  %s3047_s16 = sshll.u32 (!%p4682_p10), %s3863_s15, 3 }
  0x4e   : > { %s231_s23 = scalar_lea.sflag (!%p4682_p10), [#allocation3], %s3863_s15  ;;  %s234_s27 = scalar_lea.vmem (!%p4682_p10), [#allocation2], %s3047_s16 }
  0x52   : > { %3664 = dma.done.wait (%p4683_p4), %s231_s23, 128  }
  0x53   : > { %3666 = vsyncadd (%p4683_p4), %s231_s23, 4294967168  ;;  %p4684_p8 = scmp.eq.s32.totalorder %s3766_s22, 0 }
  0x55   : > { %3668 = dma.done.wait (%p4684_p8), [#allocation6], 1536   ;;  %p4685_p7 = pmov %p4684_p8 }
  0x56   : > { %v3698_v0 = vmov 0.0   ;;  %v277_v1 = vld [vmem:[#allocation5 + $0x38] sm:$0xff]  ;;  %v276_v2 = vld [vmem:[#allocation5 + $0x30] sm:$0xff]  ;;  %v275_v3 = vld [vmem:[#allocation5 + $0x28] sm:$0xff]  ;;  %vm290_vm0 = vcmask 261120   ;;  %v280_v10 = vlaneseq  ;;  %s3699_s10 = smov 56  }
  0x57   : > { %3670 = vsyncadd (%p4685_p7), [#allocation6], 4294965760  ;;  %358 = vmatprep.mubr.f32.mxu0 %v3698_v0  ;;  %318 = vmatprep.subr.mxu0 %v277_v1  ;;  %v274_v4 = vld [vmem:[#allocation5 + $0x20] sm:$0xff]  ;;  %v273_v5 = vld [vmem:[#allocation5 + $0x18] sm:$0xff]  ;;  %s3700_s12 = smov 96   ;;  %s3701_s13 = smov 48  }
  0x58   : > { %319 = vmatpush1.msra.mxu0 %v276_v2  ;;  %v272_v6 = vld [vmem:[#allocation5 + $0x10] sm:$0xff]  ;;  %v271_v7 = vld [vmem:[#allocation5 + $0x8] sm:$0xff]  ;;  %v270_v8 = vld [vmem:[#allocation5] sm:$0xff]  ;;  %v3880_v11 = vshrl.u32 %v280_v10, 7  ;;  %s3702_s14 = smov 64   ;;  %vm474_vm1 = vcmask 64512  }
  0x59   : > { %320 = vmatprep.subr.mxu0 %v275_v3  ;;  %v269_v9 = vld [vmem:[%s234_s27] sm:$0xff]  ;;  %v3703_v21 = vmov 1966171168   ;;  %s3704_s6 = smov 120   ;;  %s3705_s7 = smov 112   ;;  %v368_v58 = vand.u32 127, %v280_v10 }
  0x5a   : > { %321 = vmatpush1.msra.mxu0 %v274_v4  ;;  %v3883_v12 = vsub.s32 0, %v3880_v11  ;;  %v278_v13 = vld [vmem:[%s4667_s2] sm:$0x3]  ;;  %v286_v14 = vsub.s32 1, %v3880_v11  ;;  %v374_v22 = vunpack.c.l.s4 %v3703_v21  ;;  %s3706_s8 = smov 104   ;;  %s3707_s29 = smov 40  }
  0x5b   : > { %322 = vmatprep.subr.mxu0 %v273_v5  ;;  %vm369_vm2 = vcmp.le.s32.totalorder %v368_v58, %v3880_v11  ;;  %v3708_v59 = vmov -inf   ;;  %v622_v62 = vsub.s32 2, %v3880_v11  ;;  %v636_v1 = vsub.s32 4, %v3880_v11  ;;  %s3709_s9 = smov 24   ;;  %s3710_s11 = smov 8  }
  0x5c   : > { %323 = vmatpush1.msra.mxu0 %v272_v6  ;;  %v283_v15 = vrot.slane %v278_v13, %v3883_v12  ;;  %v287_v16 = vrot.slane %v278_v13, %v286_v14  ;;  %v375_v23 = vunpack.c.0.s8 %v374_v22  ;;  %v3962_v60 = vsel %vm369_vm2, 0.0, %v3708_v59  ;;  %s3711_s23 = smov 16   ;;  %s3712_s27 = smov 32  }
  0x5d   : > { %324 = vmatprep.subr.mxu0 %v271_v7  ;;  %v609_v61 = vrot.slane %v3962_v60, %v3883_v12  ;;  %v623_v63 = vrot.slane %v3962_v60, %v622_v62  ;;  %v616_v2 = vrot.slane %v3962_v60, %v286_v14  ;;  %v629_v3 = vsub.s32 3, %v3880_v11  ;;  %p4686_p0 = scmp.ne.s32.totalorder %s4680_s30, 0 }
  0x5e   : > { %325 = vmatpush1.msra.mxu0 %v270_v8  ;;  %v3903_v24 = vsub.s32 %v375_v23, %v3880_v11  ;;  %v637_v4 = vrot.slane %v3962_v60, %v636_v1  ;;  %v650_v5 = vsub.s32 6, %v3880_v11  ;;  %v643_v7 = vsub.s32 5, %v3880_v11 }
  0x5f   : > { %3051 = vmatmul.mubr.msk.f32.vlgmr.msra.gmra.mxu0 %vm290_vm0, %v269_v9  ;;  %v630_v6 = vrot.slane %v3962_v60, %v629_v3  ;;  %v657_v10 = vsub.s32 7, %v3880_v11  ;;  %vm2777_vm3 = vcmask 1041409   ;;  %vm2779_vm4 = vcmask 1042434  }
  0x60   : > { %v651_v8 = vrot.slane %v3962_v60, %v650_v5  ;;  %v644_v9 = vrot.slane %v3962_v60, %v643_v7  ;;  %vm2781_vm5 = vcmask 1043459   ;;  %vm2783_vm6 = vcmask 1044484  }
  0x61   : > { %v658_v13 = vrot.slane %v3962_v60, %v657_v10  ;;  %vm2785_vm7 = vcmask 1045509   ;;  %vm2787_vm8 = vcmask 1046534   ;;  %vm2789_vm9 = vcmask 1047559  }
  0x62   : > { %vm3713_vm10 = vmmov 0   ;;  %vm2847_vm11 = vcmask 130048   ;;  %vm2849_vm12 = vcmask 195584  }
 0x11f   : > { %v360_v17 = vpop.f32.mrf.mxu0 }
 0x120   : > { %v3892_v18 = vadd.f32 %v360_v17, %v283_v15 }
 0x121   : > { %v362_v19 = vpop.f32.mrf.mxu0 }
 0x122   : > { %v3894_v20 = vadd.f32 %v362_v19, %v287_v16  ;;  %1164 = vrot.lane.b32.xlu1 %v3892_v18, %s3699_s10  ;;  %461 = vrot.lane.b32.xlu0 %v3892_v18, %s3700_s12  ;;  %v379_v25 = vrot.slane %v3892_v18, %v3903_v24  ;;  %v372_v27 = vcombine.high %v3892_v18, %v3892_v18  ;;  %s3123_s10 = sshll.u32 %s3766_s22, 7  ;;  %s268_s12 = scalar_lea.vmem [#allocation8], %s3047_s16 }
 0x123   : > { %s3714_s22 = smov [#allocation8]  }
 0x124   : > { %3217 = vmatprep.subr.mxu0 %v3894_v20  ;;  %v387_v26 = vcombine.high %v379_v25, %v379_v25  ;;  %v395_v28 = vrot.slane %v379_v25, %v3903_v24  ;;  %v386_v30 = vrot.slane %v372_v27, %v3903_v24  ;;  %s3625_s16 = sshll.u32 %s3714_s22, 4  ;;  %s3626_s16 = int_to_ptr.vmem [resolvable:$false] %s3625_s16 }
 0x125   : > { %3218 = vmatpush3.msra.mxu0 %v3894_v20 }
 0x126   : > { %1705 = vrot.lane.b32.xlu1 %v3892_v18, %s3701_s13  ;;  %472 = vrot.lane.b32.xlu0 %v3892_v18, %s3702_s14  ;;  %v409_v29 = vrot.slane %v387_v26, %v3903_v24  ;;  %v424_v31 = vrot.slane %v395_v28, %v3883_v12  ;;  %v417_v33 = vcombine.high %v395_v28, %v395_v28  ;;  %s2950_s13 = sshll.u32 %s268_s12, 4  ;;  %s2951_s13 = int_to_ptr.vmem [resolvable:$true] %s2950_s13 }
 0x127   : > { %v388_v36 = vcombine.high %v386_v30, %v386_v30  ;;  %v402_v40 = vrot.slane %v386_v30, %v3903_v24  ;;  %p3628_p6 = scmp.lt.s32.totalorder %s2951_s13, %s3626_s16 }
 0x128   : > { %v428_v32 = vrot.slane %v409_v29, %v3883_v12  ;;  %v419_v35 = vcombine.high %v409_v29, %v409_v29  ;;  %v432_v39 = vrot.slane %v417_v33, %v3883_v12 }
 0x129   : > { %v416_v44 = vrot.slane %v388_v36, %v3903_v24  ;;  %v440_v47 = vrot.slane %v402_v40, %v3883_v12  ;;  %v418_v48 = vcombine.high %v402_v40, %v402_v40 }
 0x12a   : > { %v436_v43 = vrot.slane %v419_v35, %v3883_v12 }
 0x12b   : > { %v444_v49 = vrot.slane %v416_v44, %v3883_v12  ;;  %v420_v50 = vcombine.high %v416_v44, %v416_v44  ;;  %v448_v54 = vrot.slane %v418_v48, %v3883_v12  ;;  %v671_v48 = vcombine.high %v3962_v60, %v3962_v60 }
 0x12d   : > { %v452_v55 = vrot.slane %v420_v50, %v3883_v12 }
 0x194   : > { %v462_v34 = vpop.permute.xlu0 %461  ;;  %v1165_v41 = vpop.permute.xlu1 %1164 }
 0x195   : > { %v464_v37 = vmul.f32 %v462_v34, %v424_v31  ;;  %v465_v38 = vmul.f32 %v462_v34, %v428_v32  ;;  %v466_v45 = vmul.f32 %v462_v34, %v432_v39  ;;  %v467_v46 = vmul.f32 %v462_v34, %v436_v43 }
 0x196   : > { %v468_v51 = vmul.f32 %v462_v34, %v440_v47  ;;  %v469_v53 = vmul.f32 %v462_v34, %v444_v49  ;;  %v470_v56 = vmul.f32 %v462_v34, %v448_v54  ;;  %v471_v57 = vmul.f32 %v462_v34, %v452_v55 }
 0x197   : > { %1148 = vrot.lane.b32.xlu1 %v464_v37, %s3704_s6  ;;  %3205 = vmatprep.mubr.msk.f32.mxu1 %vm474_vm1, %v464_v37 }
 0x198   : > { %1150 = vrot.lane.b32.xlu0 %v465_v38, %s3704_s6  ;;  %v473_v42 = vpop.permute.xlu0 %472  ;;  %v3929_v52 = vpop.permute.xlu1 %1705 }
 0x199   : > { %3203 = vmatprep.subr.msk.mxu1 %vm474_vm1, %v473_v42 }
 0x19a   : > { %3204 = vmatpush3.xpose.msk.msra.mxu1 %vm474_vm1, %v473_v42 }
 0x19b   : > { %3231 = vmatprep.subr.msk.mxu1 %vm474_vm1, %v1165_v41  ;;  %1152 = vrot.lane.b32.xlu1 %v466_v45, %s3704_s6 }
 0x19c   : > { %1154 = vrot.lane.b32.xlu0 %v467_v46, %s3704_s6 }
 0x19d   : > { %3206 = vmatmul.mubr.msk.f32.vlgmr.msra.gmra.mxu1 %vm474_vm1, %v465_v38 }
 0x19e   : > { %3208 = vmatprep.mubr.msk.f32.mxu1 %vm474_vm1, %v466_v45  ;;  %3232 = vmatpush3.xpose.msk.msra.mxu1 %vm474_vm1, %v1165_v41  ;;  %v678_v41 = vrot.slane %v3962_v60, %v3903_v24 }
 0x19f   : > { %3259 = vmatprep.subr.msk.mxu1 %vm474_vm1, %v3929_v52  ;;  %1156 = vrot.lane.b32.xlu1 %v468_v51, %s3704_s6 }
 0x1a0   : > { %1158 = vrot.lane.b32.xlu0 %v469_v53, %s3704_s6  ;;  %v686_v42 = vcombine.high %v678_v41, %v678_v41 }
 0x1a1   : > { %3209 = vmatmul.mubr.msk.f32.gmra.mxu1 %vm474_vm1, %v467_v46 }
 0x1a2   : > { %3211 = vmatprep.mubr.msk.f32.mxu1 %vm474_vm1, %v468_v51  ;;  %v708_v44 = vrot.slane %v686_v42, %v3903_v24 }
 0x1a3   : > { %1160 = vrot.lane.b32.xlu1 %v470_v56, %s3704_s6 }
 0x1a4   : > { %1162 = vrot.lane.b32.xlu0 %v471_v57, %s3704_s6  ;;  %v4022_v47 = vrot.slane %v708_v44, %v3883_v12 }
 0x1a5   : > { %3212 = vmatmul.mubr.msk.f32.gmra.mxu1 %vm474_vm1, %v469_v53 }
 0x1a6   : > { %3214 = vmatprep.mubr.msk.f32.mxu1 %vm474_vm1, %v470_v56 }
 0x1a7   : > { %1691 = vrot.lane.b32.xlu1 %v465_v38, %s3705_s7 }
 0x1a8   : > { %1689 = vrot.lane.b32.xlu0 %v464_v37, %s3705_s7 }
 0x1a9   : > { %3215 = vmatmul.mubr.msk.f32.gmra.mxu1 %vm474_vm1, %v471_v57 }
 0x1ab   : > { %1695 = vrot.lane.b32.xlu1 %v467_v46, %s3705_s7 }
 0x1ac   : > { %1693 = vrot.lane.b32.xlu0 %v466_v45, %s3705_s7 }
 0x1af   : > { %1699 = vrot.lane.b32.xlu1 %v469_v53, %s3705_s7 }
 0x1b0   : > { %1697 = vrot.lane.b32.xlu0 %v468_v51, %s3705_s7 }
 0x1b3   : > { %1703 = vrot.lane.b32.xlu1 %v471_v57, %s3705_s7 }
 0x1b4   : > { %1701 = vrot.lane.b32.xlu0 %v470_v56, %s3705_s7 }
 0x1b7   : > { %2229 = vrot.lane.b32.xlu1 %v464_v37, %s3706_s8 }
 0x1b8   : > { %2245 = vrot.lane.b32.xlu0 %v3892_v18, %s3707_s29  ;;  %s3621_s29 = scalar_lea.vmem %s2951_s13, 128 }
 0x1b9   : > { %p3622_p11 = scmp.ne.s32.totalorder %s2951_s13, %s3621_s29 }
 0x1bb   : > { %2233 = vrot.lane.b32.xlu1 %v466_v45, %s3706_s8  ;;  %v694_v45 = vrot.slane %v678_v41, %v3903_v24  ;;  %p3623_p1 = pnand %p3622_p11, %p4686_p0 }
 0x1bc   : > { %2231 = vrot.lane.b32.xlu0 %v465_v38, %s3706_s8 }
 0x1bd   : > { %p3624_p2 = pneg %p3623_p1 }
 0x1bf   : > { %2237 = vrot.lane.b32.xlu1 %v468_v51, %s3706_s8 }
 0x1c0   : > { %2235 = vrot.lane.b32.xlu0 %v467_v46, %s3706_s8 }
 0x1c3   : > { %2241 = vrot.lane.b32.xlu1 %v470_v56, %s3706_s8 }
 0x1c4   : > { %2239 = vrot.lane.b32.xlu0 %v469_v53, %s3706_s8  ;;  %v716_v53 = vcombine.high %v694_v45, %v694_v45 }
 0x1c7   : > { %611 = vbcast.lane.b32.xlu1 %v609_v61, 256  ;;  %v4043_v61 = vrot.slane %v716_v53, %v3883_v12 }
 0x1c8   : > { %2243 = vrot.lane.b32.xlu0 %v471_v57, %s3706_s8  ;;  %v685_v57 = vrot.slane %v671_v48, %v3903_v24 }
 0x1ca   : > { %v701_v62 = vrot.slane %v685_v57, %v3903_v24 }
 0x1cb   : > { %625 = vbcast.lane.b32.xlu1 %v623_v63, 256 }
 0x1cc   : > { %618 = vbcast.lane.b32.xlu0 %v616_v2, 256  ;;  %v717_v7 = vcombine.high %v701_v62, %v701_v62 }
 0x1cf   : > { %639 = vbcast.lane.b32.xlu1 %v637_v4, 256 }
 0x1d0   : > { %632 = vbcast.lane.b32.xlu0 %v630_v6, 256  ;;  %v4055_v6 = vrot.slane %v701_v62, %v3883_v12 }
 0x1d3   : > { %653 = vbcast.lane.b32.xlu1 %v651_v8, 256 }
 0x1d4   : > { %646 = vbcast.lane.b32.xlu0 %v644_v9, 256 }
 0x1d8   : > { %660 = vbcast.lane.b32.xlu0 %v658_v13, 256 }
 0x209   : > { %v1149_v14 = vpop.permute.xlu1 %1148 }
 0x20a   : > { %v1151_v15 = vpop.permute.xlu0 %1150  ;;  %3233 = vmatprep.mubr.msk.f32.mxu1 %vm474_vm1, %v1149_v14 }
 0x20b   : > { %3234 = vmatmul.mubr.msk.f32.vlgmr.msra.gmra.mxu1 %vm474_vm1, %v1151_v15 }
 0x20c   : > { %3260 = vmatpush3.xpose.msk.msra.mxu1 %vm474_vm1, %v3929_v52  ;;  %v4030_v52 = vrot.slane %v694_v45, %v3883_v12 }
 0x20d   : > { %v1153_v16 = vpop.permute.xlu1 %1152 }
 0x20e   : > { %v1155_v17 = vpop.permute.xlu0 %1154  ;;  %3236 = vmatprep.mubr.msk.f32.mxu1 %vm474_vm1, %v1153_v16  ;;  %v4066_v16 = vrot.slane %v717_v7, %v3883_v12 }
 0x20f   : > { %3237 = vmatmul.mubr.msk.f32.gmra.mxu1 %vm474_vm1, %v1155_v17 }
 0x211   : > { %v1157_v11 = vpop.permute.xlu1 %1156 }
 0x212   : > { %v1159_v19 = vpop.permute.xlu0 %1158  ;;  %3239 = vmatprep.mubr.msk.f32.mxu1 %vm474_vm1, %v1157_v11 }
 0x213   : > { %3240 = vmatmul.mubr.msk.f32.gmra.mxu1 %vm474_vm1, %v1159_v19 }
 0x215   : > { %v1161_v21 = vpop.permute.xlu1 %1160 }
 0x216   : > { %v1163_v22 = vpop.permute.xlu0 %1162  ;;  %3242 = vmatprep.mubr.msk.f32.mxu1 %vm474_vm1, %v1161_v21 }
 0x217   : > { %3243 = vmatmul.mubr.msk.f32.gmra.mxu1 %vm474_vm1, %v1163_v22 }
 0x219   : > { %v1692_v23 = vpop.permute.xlu1 %1691 }
 0x21a   : > { %v1690_v25 = vpop.permute.xlu0 %1689 }
 0x21b   : > { %3261 = vmatprep.mubr.msk.f32.mxu1 %vm474_vm1, %v1690_v25  ;;  %v718_v25 = vcombine.high %v708_v44, %v708_v44 }
 0x21c   : > { %3262 = vmatmul.mubr.msk.f32.vlgmr.msra.gmra.mxu1 %vm474_vm1, %v1692_v23 }
 0x21d   : > { %v1696_v26 = vpop.permute.xlu1 %1695 }
 0x21e   : > { %v1694_v27 = vpop.permute.xlu0 %1693 }
 0x21f   : > { %3264 = vmatprep.mubr.msk.f32.mxu1 %vm474_vm1, %v1694_v27 }
 0x220   : > { %3265 = vmatmul.mubr.msk.f32.gmra.mxu1 %vm474_vm1, %v1696_v26  ;;  %v687_v26 = vcombine.high %v685_v57, %v685_v57 }
 0x221   : > { %v1700_v28 = vpop.permute.xlu1 %1699 }
 0x222   : > { %v1698_v29 = vpop.permute.xlu0 %1697 }
 0x223   : > { %3267 = vmatprep.mubr.msk.f32.mxu1 %vm474_vm1, %v1698_v29  ;;  %v4084_v29 = vrot.slane %v718_v25, %v3883_v12 }
 0x224   : > { %3268 = vmatmul.mubr.msk.f32.gmra.mxu1 %vm474_vm1, %v1700_v28 }
 0x225   : > { %v1704_v30 = vpop.permute.xlu1 %1703 }
 0x226   : > { %v1702_v31 = vpop.permute.xlu0 %1701 }
 0x227   : > { %3270 = vmatprep.mubr.msk.f32.mxu1 %vm474_vm1, %v1702_v31 }
 0x228   : > { %3271 = vmatmul.mubr.msk.f32.gmra.mxu1 %vm474_vm1, %v1704_v30  ;;  %v715_v30 = vrot.slane %v687_v26, %v3903_v24 }
 0x229   : > { %v2230_v32 = vpop.permute.xlu1 %2229 }
 0x22a   : > { %v2246_v33 = vpop.permute.xlu0 %2245  ;;  %3289 = vmatprep.mubr.msk.f32.mxu1 %vm474_vm1, %v2230_v32 }
 0x22b   : > { %3287 = vmatprep.subr.msk.mxu1 %vm474_vm1, %v2246_v33 }
 0x22c   : > { %3288 = vmatpush3.xpose.msk.msra.mxu1 %vm474_vm1, %v2246_v33  ;;  %v4092_v33 = vrot.slane %v715_v30, %v3883_v12 }
 0x22d   : > { %v2234_v34 = vpop.permute.xlu1 %2233  ;;  %3315 = vmatprep.subr.mxu1 %v3698_v0 }
 0x22e   : > { %v2232_v35 = vpop.permute.xlu0 %2231 }
 0x22f   : > { %3290 = vmatmul.mubr.msk.f32.vlgmr.msra.gmra.mxu1 %vm474_vm1, %v2232_v35 }
 0x230   : > { %3292 = vmatprep.mubr.msk.f32.mxu1 %vm474_vm1, %v2234_v34  ;;  %v719_v34 = vcombine.high %v715_v30, %v715_v30 }
 0x231   : > { %v2238_v36 = vpop.permute.xlu1 %2237 }
 0x232   : > { %v2236_v37 = vpop.permute.xlu0 %2235  ;;  %v4103_v24 = vrot.slane %v719_v34, %v3883_v12 }
 0x233   : > { %3293 = vmatmul.mubr.msk.f32.gmra.mxu1 %vm474_vm1, %v2236_v37 }
 0x234   : > { %3295 = vmatprep.mubr.msk.f32.mxu1 %vm474_vm1, %v2238_v36 }
 0x235   : > { %v2242_v38 = vpop.permute.xlu1 %2241 }
 0x236   : > { %v2240_v39 = vpop.permute.xlu0 %2239 }
 0x237   : > { %3296 = vmatmul.mubr.msk.f32.gmra.mxu1 %vm474_vm1, %v2240_v39 }
 0x238   : > { %3298 = vmatprep.mubr.msk.f32.mxu1 %vm474_vm1, %v2242_v38 }
 0x239   : > { %v4015_v43 = vpop.permute.xlu1 %611 }
 0x23a   : > { %v2244_v40 = vpop.permute.xlu0 %2243 }
 0x23b   : > { %3299 = vmatmul.mubr.msk.f32.gmra.mxu1 %vm474_vm1, %v2244_v40 }
 0x23c   : > { %3323 = vmatprep.mubr.msk.f32.mxu1 %vm3713_vm10, %v3698_v0 }
 0x23d   : > { %v4026_v50 = vpop.permute.xlu1 %625 }
 0x23e   : > { %v4019_v46 = vpop.permute.xlu0 %618 }
 0x241   : > { %v4046_v1 = vpop.permute.xlu1 %639 }
 0x242   : > { %v4078_v23 = vpop.permute.xlu0 %632 }
 0x245   : > { %v4060_v14 = vpop.permute.xlu1 %653 }
 0x246   : > { %v4080_v27 = vpop.permute.xlu0 %646 }
 0x24a   : > { %v4094_v35 = vpop.permute.xlu0 %660 }
 0x25d   : > { %v3207_v49 = vpop.f32.mrf.mxu1 }
 0x25e   : > { %v663_v51 = vadd.f32 %v3207_v49, %v4019_v46 }
 0x25f   : > { %v567_v54 = vpop.f32.mrf.mxu1 }
 0x260   : > { %v4033_v55 = vadd.f32 %v4022_v47, %v663_v51  ;;  %v662_v56 = vadd.f32 %v4015_v43, %v567_v54 }
 0x261   : > { %v3210_v58 = vpop.f32.mrf.mxu1 }
 0x262   : > { %v771_v59 = vsel %vm474_vm1, %v4033_v55, -inf  ;;  %v4040_v60 = vadd.f32 %v4030_v52, %v662_v56  ;;  %v665_v28 = vadd.f32 %v3210_v58, %v4078_v23 }
 0x263   : > { %v577_v63 = vpop.f32.mrf.mxu1  ;;  %772 = vmax.xlane.f32.xlu0 %v771_v59 }
 0x264   : > { %v768_v2 = vsel %vm474_vm1, %v4040_v60, -inf  ;;  %v664_v3 = vadd.f32 %v4026_v50, %v577_v63  ;;  %v4088_v31 = vadd.f32 %v4084_v29, %v665_v28 }
 0x265   : > { %v3213_v4 = vpop.f32.mrf.mxu1  ;;  %769 = vmax.xlane.f32.xlu1 %v768_v2 }
 0x266   : > { %v4052_v5 = vadd.f32 %v4043_v61, %v664_v3  ;;  %v667_v32 = vadd.f32 %v3213_v4, %v4080_v27  ;;  %v777_v37 = vsel %vm474_vm1, %v4088_v31, -inf }
 0x267   : > { %v587_v8 = vpop.f32.mrf.mxu1 }
 0x268   : > { %v774_v9 = vsel %vm474_vm1, %v4052_v5, -inf  ;;  %v666_v10 = vadd.f32 %v4046_v1, %v587_v8  ;;  %v4100_v38 = vadd.f32 %v4092_v33, %v667_v32 }
 0x269   : > { %775 = vmax.xlane.f32.xlu0 %v774_v9  ;;  %v3216_v13 = vpop.f32.mrf.mxu1 }
 0x26a   : > { %v4063_v15 = vadd.f32 %v4055_v6, %v666_v10  ;;  %v669_v36 = vadd.f32 %v3216_v13, %v4094_v35  ;;  %v783_v39 = vsel %vm474_vm1, %v4100_v38, -inf }
 0x26b   : > { %v597_v17 = vpop.f32.mrf.mxu1 }
 0x26c   : > { %v668_v11 = vadd.f32 %v4060_v14, %v597_v17  ;;  %v780_v19 = vsel %vm474_vm1, %v4063_v15, -inf  ;;  %v4108_v40 = vadd.f32 %v4103_v24, %v669_v36 }
 0x26d   : > { %781 = vmax.xlane.f32.xlu0 %v780_v19 }
 0x26e   : > { %v4072_v21 = vadd.f32 %v4066_v16, %v668_v11  ;;  %v789_v41 = vsel %vm474_vm1, %v4108_v40, -inf }
 0x270   : > { %v786_v22 = vsel %vm474_vm1, %v4072_v21, -inf }
 0x271   : > { %787 = vmax.xlane.f32.xlu0 %v786_v22 }
 0x276   : > { %1474 = vrot.lane.b32.xlu1 %v3894_v20, %s3704_s6 }
 0x29a   : > { %778 = vmax.xlane.f32.xlu1 %v777_v37 }
 0x29e   : > { %784 = vmax.xlane.f32.xlu1 %v783_v39 }
 0x2a2   : > { %790 = vmax.xlane.f32.xlu1 %v789_v41 }
 0x2cb   : > { %v3235_v42 = vpop.f32.mrf.mxu1 }
 0x2cc   : > { %v1290_v44 = vadd.f32 %v3235_v42, %v4019_v46 }
 0x2cd   : > { %v1250_v45 = vpop.f32.mrf.mxu1 }
 0x2ce   : > { %v1289_v48 = vadd.f32 %v1250_v45, %v4015_v43  ;;  %v4115_v12 = vadd.f32 %v1290_v44, %v4022_v47 }
 0x2cf   : > { %v3238_v49 = vpop.f32.mrf.mxu1 }
 0x2d0   : > { %v1292_v51 = vadd.f32 %v3238_v49, %v4078_v23  ;;  %v1308_v53 = vsel %vm474_vm1, %v4115_v12, -inf  ;;  %v4121_v54 = vadd.f32 %v1289_v48, %v4030_v52 }
 0x2d1   : > { %1309 = vmax.xlane.f32.xlu1 %v1308_v53  ;;  %v1260_v56 = vpop.f32.mrf.mxu1 }
 0x2d2   : > { %v1291_v57 = vadd.f32 %v1260_v56, %v4026_v50  ;;  %v1305_v58 = vsel %vm474_vm1, %v4121_v54, -inf  ;;  %v4127_v59 = vadd.f32 %v1292_v51, %v4084_v29 }
 0x2d3   : > { %v3241_v62 = vpop.f32.mrf.mxu1  ;;  %1306 = vmax.xlane.f32.xlu0 %v1305_v58 }
 0x2d4   : > { %v1294_v63 = vadd.f32 %v3241_v62, %v4080_v27  ;;  %v1314_v2 = vsel %vm474_vm1, %v4127_v59, -inf  ;;  %v4133_v3 = vadd.f32 %v1291_v57, %v4043_v61 }
 0x2d5   : > { %1315 = vmax.xlane.f32.xlu1 %v1314_v2  ;;  %v1270_v4 = vpop.f32.mrf.mxu1 }
 0x2d6   : > { %v1293_v7 = vadd.f32 %v1270_v4, %v4046_v1  ;;  %v1311_v8 = vsel %vm474_vm1, %v4133_v3, -inf  ;;  %v4139_v9 = vadd.f32 %v1294_v63, %v4092_v33 }
 0x2d7   : > { %v3244_v10 = vpop.f32.mrf.mxu1  ;;  %1312 = vmax.xlane.f32.xlu0 %v1311_v8 }
 0x2d8   : > { %v1296_v13 = vadd.f32 %v3244_v10, %v4094_v35  ;;  %v1320_v17 = vsel %vm474_vm1, %v4139_v9, -inf  ;;  %v4145_v11 = vadd.f32 %v1293_v7, %v4055_v6 }
 0x2d9   : > { %1321 = vmax.xlane.f32.xlu1 %v1320_v17  ;;  %v1280_v19 = vpop.f32.mrf.mxu1 }
 0x2da   : > { %v1295_v22 = vadd.f32 %v1280_v19, %v4060_v14  ;;  %v1317_v25 = vsel %vm474_vm1, %v4145_v11, -inf  ;;  %v4151_v26 = vadd.f32 %v1296_v13, %v4103_v24 }
 0x2db   : > { %1318 = vmax.xlane.f32.xlu0 %v1317_v25 }
 0x2dc   : > { %v3263_v28 = vpop.f32.mrf.mxu1  ;;  %v1326_v30 = vsel %vm474_vm1, %v4151_v26, -inf  ;;  %v4156_v32 = vadd.f32 %v1295_v22, %v4066_v16 }
 0x2dd   : > { %v1831_v34 = vadd.f32 %v3263_v28, %v4019_v46  ;;  %1327 = vmax.xlane.f32.xlu1 %v1326_v30 }
 0x2de   : > { %v1791_v36 = vpop.f32.mrf.mxu1  ;;  %v1323_v37 = vsel %vm474_vm1, %v4156_v32, -inf }
 0x2df   : > { %v1830_v39 = vadd.f32 %v1791_v36, %v4015_v43  ;;  %1324 = vmax.xlane.f32.xlu0 %v1323_v37  ;;  %v4163_v41 = vadd.f32 %v1831_v34, %v4022_v47 }
 0x2e0   : > { %v3266_v42 = vpop.f32.mrf.mxu1 }
 0x2e1   : > { %v1833_v44 = vadd.f32 %v3266_v42, %v4078_v23  ;;  %v1849_v45 = vsel %vm474_vm1, %v4163_v41, -inf  ;;  %v4169_v48 = vadd.f32 %v1830_v39, %v4030_v52 }
 0x2e2   : > { %1850 = vmax.xlane.f32.xlu1 %v1849_v45  ;;  %v1801_v49 = vpop.f32.mrf.mxu1 }
 0x2e3   : > { %v1832_v51 = vadd.f32 %v1801_v49, %v4026_v50  ;;  %v1846_v53 = vsel %vm474_vm1, %v4169_v48, -inf  ;;  %v4175_v56 = vadd.f32 %v1833_v44, %v4084_v29 }
 0x2e4   : > { %v3269_v57 = vpop.f32.mrf.mxu1  ;;  %1847 = vmax.xlane.f32.xlu0 %v1846_v53 }
 0x2e5   : > { %v1835_v58 = vadd.f32 %v3269_v57, %v4080_v27  ;;  %v1855_v62 = vsel %vm474_vm1, %v4175_v56, -inf  ;;  %v4181_v63 = vadd.f32 %v1832_v51, %v4043_v61 }
 0x2e6   : > { %1856 = vmax.xlane.f32.xlu1 %v1855_v62  ;;  %v1811_v2 = vpop.f32.mrf.mxu1 }
 0x2e7   : > { %v1834_v4 = vadd.f32 %v1811_v2, %v4046_v1  ;;  %v1852_v7 = vsel %vm474_vm1, %v4181_v63, -inf  ;;  %v4187_v8 = vadd.f32 %v1835_v58, %v4092_v33 }
 0x2e8   : > { %v3272_v10 = vpop.f32.mrf.mxu1  ;;  %1853 = vmax.xlane.f32.xlu0 %v1852_v7 }
 0x2e9   : > { %v1837_v13 = vadd.f32 %v3272_v10, %v4094_v35  ;;  %v1861_v17 = vsel %vm474_vm1, %v4187_v8, -inf  ;;  %v4193_v19 = vadd.f32 %v1834_v4, %v4055_v6 }
 0x2ea   : > { %1862 = vmax.xlane.f32.xlu1 %v1861_v17  ;;  %v1821_v22 = vpop.f32.mrf.mxu1 }
 0x2eb   : > { %v1836_v25 = vadd.f32 %v1821_v22, %v4060_v14  ;;  %v1858_v28 = vsel %vm474_vm1, %v4193_v19, -inf  ;;  %v4199_v30 = vadd.f32 %v1837_v13, %v4103_v24 }
 0x2ec   : > { %1859 = vmax.xlane.f32.xlu0 %v1858_v28  ;;  %v773_v34 = vpop.xlane.xlu0 %772 }
 0x2ed   : > { %v798_v36 = vrot.slane %v773_v34, 4  ;;  %v1867_v37 = vsel %vm474_vm1, %v4199_v30, -inf  ;;  %v4204_v39 = vadd.f32 %v1836_v25, %v4066_v16 }
 0x2ee   : > { %1868 = vmax.xlane.f32.xlu1 %v1867_v37  ;;  %v770_v42 = vpop.xlane.xlu1 %769 }
 0x2ef   : > { %v799_v44 = vmax.f32 %v773_v34, %v798_v36  ;;  %v792_v45 = vrot.slane %v770_v42, 4  ;;  %v3291_v49 = vpop.f32.mrf.mxu1  ;;  %v1864_v51 = vsel %vm474_vm1, %v4204_v39, -inf }
 0x2f0   : > { %v2371_v53 = vadd.f32 %v3291_v49, %v4019_v46  ;;  %1865 = vmax.xlane.f32.xlu0 %v1864_v51 }
 0x2f1   : > { %v800_v57 = vrot.slane %v799_v44, 2  ;;  %v793_v58 = vmax.f32 %v770_v42, %v792_v45  ;;  %v2331_v62 = vpop.f32.mrf.mxu1 }
 0x2f2   : > { %v2370_v2 = vadd.f32 %v2331_v62, %v4015_v43  ;;  %v4210_v4 = vpop.permute.xlu1 %1474  ;;  %v776_v7 = vpop.xlane.xlu0 %775  ;;  %v4213_v10 = vadd.f32 %v2371_v53, %v4022_v47 }
 0x2f3   : > { %v801_v13 = vmax.f32 %v799_v44, %v800_v57  ;;  %v794_v17 = vrot.slane %v793_v58, 2  ;;  %v804_v22 = vrot.slane %v776_v7, 4  ;;  %v3294_v25 = vpop.f32.mrf.mxu1  ;;  %3245 = vmatprep.subr.mxu0 %v4210_v4 }
 0x2f4   : > { %v2373_v46 = vadd.f32 %v3294_v25, %v4078_v23  ;;  %v2389_v28 = vsel %vm474_vm1, %v4213_v10, -inf  ;;  %v4220_v34 = vadd.f32 %v2370_v2, %v4030_v52 }
 0x2f5   : > { %v802_v43 = vrot.slane %v801_v13, 1  ;;  %v795_v36 = vmax.f32 %v793_v58, %v794_v17  ;;  %v805_v37 = vmax.f32 %v776_v7, %v804_v22  ;;  %2390 = vmax.xlane.f32.xlu1 %v2389_v28  ;;  %v2341_v47 = vpop.f32.mrf.mxu1 }
 0x2f6   : > { %v2372_v42 = vadd.f32 %v2341_v47, %v4026_v50  ;;  %v2386_v44 = vsel %vm474_vm1, %v4220_v34, -inf  ;;  %v4226_v45 = vadd.f32 %v2373_v46, %v4084_v29 }
 0x2f7   : > { %v803_v23 = vmax.f32 %v801_v13, %v802_v43  ;;  %v796_v49 = vrot.slane %v795_v36, 1  ;;  %v806_v51 = vrot.slane %v805_v37, 2  ;;  %v3297_v53 = vpop.f32.mrf.mxu1  ;;  %2387 = vmax.xlane.f32.xlu0 %v2386_v44  ;;  %v782_v44 = vpop.xlane.xlu0 %781 }
 0x2f8   : > { %v2375_v52 = vadd.f32 %v3297_v53, %v4080_v27  ;;  %v2395_v57 = vsel %vm474_vm1, %v4226_v45, -inf  ;;  %v4232_v58 = vadd.f32 %v2372_v42, %v4043_v61 }
 0x2f9   : > { %v841_v50 = vsub.f32 %v4033_v55, %v803_v23  ;;  %v797_v62 = vmax.f32 %v795_v36, %v796_v49  ;;  %v807_v2 = vmax.f32 %v805_v37, %v806_v51  ;;  %2396 = vmax.xlane.f32.xlu1 %v2395_v57  ;;  %v2351_v29 = vpop.f32.mrf.mxu1  ;;  %v816_v23 = vrot.slane %v782_v44, 4 }
 0x2fa   : > { %v2374_v7 = vadd.f32 %v2351_v29, %v4046_v1  ;;  %v2392_v13 = vsel %vm474_vm1, %v4232_v58, -inf  ;;  %v4239_v17 = vadd.f32 %v2375_v52, %v4092_v33 }
 0x2fb   : > { %v840_v27 = vsub.f32 %v4040_v60, %v797_v62  ;;  %v808_v22 = vrot.slane %v807_v2, 1  ;;  %v3300_v25 = vpop.f32.mrf.mxu1  ;;  %2393 = vmax.xlane.f32.xlu0 %v2392_v13  ;;  %v850_v61 = vmul.f32 1.442695, %v841_v50  ;;  %v788_v49 = vpop.xlane.xlu0 %787  ;;  %v817_v51 = vmax.f32 %v782_v44, %v816_v23 }
 0x2fc   : > { %v2377_v28 = vadd.f32 %v3300_v25, %v4094_v35  ;;  %v2401_v43 = vsel %vm474_vm1, %v4239_v17, -inf  ;;  %v4246_v1 = vadd.f32 %v2374_v7, %v4055_v6  ;;  %v828_v53 = vrot.slane %v788_v49, 4 }
 0x2fd   : > { %v848_v46 = vmul.f32 1.442695, %v840_v27  ;;  %v809_v55 = vmax.f32 %v807_v2, %v808_v22  ;;  %v2361_v36 = vpop.f32.mrf.mxu1  ;;  %v818_v52 = vrot.slane %v817_v51, 2 }
 0x2fe   : > { %v2376_v37 = vadd.f32 %v2361_v36, %v4060_v14  ;;  %v2398_v47 = vsel %vm474_vm1, %v4246_v1, -inf  ;;  %v4253_v35 = vadd.f32 %v2377_v28, %v4103_v24  ;;  %v829_v57 = vmax.f32 %v788_v49, %v828_v53 }
 0x2ff   : > { %3413 = vpow2.f32 %v848_v46  ;;  %v842_v33 = vsub.f32 %v4052_v5, %v809_v55  ;;  %2402 = vmax.xlane.f32.xlu0 %v2401_v43  ;;  %v819_v50 = vmax.f32 %v817_v51, %v818_v52 }
 0x300   : > { %3415 = vpow2.f32 %v850_v61  ;;  %v2407_v6 = vsel %vm474_vm1, %v4253_v35, -inf  ;;  %v4258_v42 = vadd.f32 %v2376_v37, %v4066_v16  ;;  %v830_v62 = vrot.slane %v829_v57, 2 }
 0x301   : > { %v852_v60 = vmul.f32 1.442695, %v842_v33 }
 0x302   : > { %v2404_v5 = vsel %vm474_vm1, %v4258_v42, -inf  ;;  %v831_v7 = vmax.f32 %v829_v57, %v830_v62 }
 0x303   : > { %3417 = vpow2.f32 %v852_v60  ;;  %2399 = vmax.xlane.f32.xlu0 %v2398_v47 }
 0x304   : > { %v832_v46 = vrot.slane %v831_v7, 1 }
 0x306   : > { %v833_v47 = vmax.f32 %v831_v7, %v832_v46 }
 0x307   : > { %2408 = vmax.xlane.f32.xlu0 %v2407_v6 }
 0x308   : > { %v846_v53 = vsub.f32 %v4072_v21, %v833_v47 }
 0x30a   : > { %2554 = vrot.lane.b32.xlu1 %v3894_v20, %s3706_s8  ;;  %s2937_s8 = scalar_lea.sflag [#allocation4], %s3863_s15 }
 0x30b   : > { %2405 = vmax.xlane.f32.xlu0 %v2404_v5 }
 0x30c   : > { %v4264_v14 = vpop.eup %3413 }
 0x30d   : > { %v4266_v24 = vpop.eup %3415  ;;  %3219 = vmatprep.mubr.msk.f32.mxu0 %vm474_vm1, %v4264_v14 }
 0x30e   : > { %1606 = vrot.lane.b32.xlu1 %v3892_v18, %s3709_s9  ;;  %3220 = vmatmul.mubr.msk.f32.vlgmr.msra.gmra.mxu0 %vm474_vm1, %v4266_v24 }
 0x30f   : > { %3246 = vmatpush3.msra.mxu0 %v4210_v4  ;;  %v820_v4 = vrot.slane %v819_v50, 1 }
 0x310   : > { %v4275_v16 = vpop.eup %3417 }
 0x311   : > { %3222 = vmatprep.mubr.msk.f32.mxu0 %vm474_vm1, %v4275_v16  ;;  %v821_v61 = vmax.f32 %v819_v50, %v820_v4 }
 0x313   : > { %v844_v37 = vsub.f32 %v4063_v15, %v821_v61  ;;  %v860_v15 = vmul.f32 1.442695, %v846_v53 }
 0x315   : > { %v856_v51 = vmul.f32 1.442695, %v844_v37 }
 0x321   : > { %2014 = vrot.lane.b32.xlu0 %v3894_v20, %s3705_s7  ;;  %s4627_s7 = scalar_lea.hbm %s4670_s5, %s3123_s10 }
 0x323   : > { %v779_v2 = vpop.xlane.xlu1 %778 }
 0x324   : > { %v810_v29 = vrot.slane %v779_v2, 4 }
 0x326   : > { %v811_v13 = vmax.f32 %v779_v2, %v810_v29 }
 0x327   : > { %v785_v27 = vpop.xlane.xlu1 %784 }
 0x328   : > { %v812_v22 = vrot.slane %v811_v13, 2  ;;  %v822_v25 = vrot.slane %v785_v27, 4 }
 0x32a   : > { %v813_v55 = vmax.f32 %v811_v13, %v812_v22  ;;  %v823_v28 = vmax.f32 %v785_v27, %v822_v25 }
 0x32b   : > { %v791_v43 = vpop.xlane.xlu1 %790 }
 0x32c   : > { %v814_v33 = vrot.slane %v813_v55, 1  ;;  %v824_v36 = vrot.slane %v823_v28, 2  ;;  %v834_v60 = vrot.slane %v791_v43, 4 }
 0x32e   : > { %v815_v20 = vmax.f32 %v813_v55, %v814_v33  ;;  %v825_v6 = vmax.f32 %v823_v28, %v824_v36  ;;  %v835_v5 = vmax.f32 %v791_v43, %v834_v60 }
 0x330   : > { %v843_v44 = vsub.f32 %v4088_v31, %v815_v20  ;;  %v826_v23 = vrot.slane %v825_v6, 1  ;;  %v836_v49 = vrot.slane %v835_v5, 2 }
 0x332   : > { %v854_v52 = vmul.f32 1.442695, %v843_v44  ;;  %v827_v57 = vmax.f32 %v825_v6, %v826_v23  ;;  %v837_v50 = vmax.f32 %v835_v5, %v836_v49 }
 0x334   : > { %3419 = vpow2.f32 %v854_v52  ;;  %v845_v62 = vsub.f32 %v4100_v38, %v827_v57  ;;  %v838_v2 = vrot.slane %v837_v50, 1 }
 0x335   : > { %3421 = vpow2.f32 %v856_v51 }
 0x336   : > { %v858_v29 = vmul.f32 1.442695, %v845_v62  ;;  %v839_v4 = vmax.f32 %v837_v50, %v838_v2 }
 0x338   : > { %3423 = vpow2.f32 %v858_v29  ;;  %v847_v7 = vsub.f32 %v4108_v40, %v839_v4 }
 0x339   : > { %3425 = vpow2.f32 %v860_v15 }
 0x33a   : > { %v862_v31 = vmul.f32 1.442695, %v847_v7 }
 0x33c   : > { %3427 = vpow2.f32 %v862_v31 }
 0x341   : > { %v4286_v13 = vpop.eup %3419 }
 0x342   : > { %v4288_v21 = vpop.eup %3421  ;;  %3223 = vmatmul.mubr.msk.f32.gmra.mxu0 %vm474_vm1, %v4286_v13 }
 0x343   : > { %3225 = vmatprep.mubr.msk.f32.mxu0 %vm474_vm1, %v4288_v21 }
 0x345   : > { %v4294_v38 = vpop.eup %3423 }
 0x346   : > { %v4296_v27 = vpop.eup %3425  ;;  %3226 = vmatmul.mubr.msk.f32.gmra.mxu0 %vm474_vm1, %v4294_v38 }
 0x347   : > { %3228 = vmatprep.mubr.msk.f32.mxu0 %vm474_vm1, %v4296_v27 }
 0x349   : > { %v4302_v40 = vpop.eup %3427 }
 0x34a   : > { %3229 = vmatmul.mubr.msk.f32.gmra.mxu0 %vm474_vm1, %v4302_v40 }
 0x35a   : > { %v1310_v22 = vpop.xlane.xlu1 %1309 }
 0x35b   : > { %v1335_v25 = vrot.slane %v1310_v22, 4 }
 0x35c   : > { %v1307_v61 = vpop.xlane.xlu0 %1306 }
 0x35d   : > { %v1336_v46 = vmax.f32 %v1310_v22, %v1335_v25  ;;  %v1329_v55 = vrot.slane %v1307_v61, 4 }
 0x35e   : > { %v1316_v28 = vpop.xlane.xlu1 %1315 }
 0x35f   : > { %v1337_v43 = vrot.slane %v1336_v46, 2  ;;  %v1330_v33 = vmax.f32 %v1307_v61, %v1329_v55  ;;  %v1347_v36 = vrot.slane %v1316_v28, 4 }
 0x360   : > { %v1313_v60 = vpop.xlane.xlu0 %1312 }
 0x361   : > { %v1338_v37 = vmax.f32 %v1336_v46, %v1337_v43  ;;  %v1331_v47 = vrot.slane %v1330_v33, 2  ;;  %v1348_v20 = vmax.f32 %v1316_v28, %v1347_v36  ;;  %v1341_v6 = vrot.slane %v1313_v60, 4 }
 0x362   : > { %v1322_v5 = vpop.xlane.xlu1 %1321 }
 0x363   : > { %v1339_v44 = vrot.slane %v1338_v37, 1  ;;  %v1332_v23 = vmax.f32 %v1330_v33, %v1331_v47  ;;  %v1349_v49 = vrot.slane %v1348_v20, 2  ;;  %v1342_v51 = vmax.f32 %v1313_v60, %v1341_v6 }
 0x364   : > { %v1359_v53 = vrot.slane %v1322_v5, 4  ;;  %v1319_v52 = vpop.xlane.xlu0 %1318 }
 0x365   : > { %v1340_v57 = vmax.f32 %v1338_v37, %v1339_v44  ;;  %v1333_v50 = vrot.slane %v1332_v23, 1  ;;  %v1350_v62 = vmax.f32 %v1348_v20, %v1349_v49  ;;  %v1343_v2 = vrot.slane %v1342_v51, 2 }
 0x366   : > { %v1360_v15 = vmax.f32 %v1322_v5, %v1359_v53  ;;  %v1353_v29 = vrot.slane %v1319_v52, 4  ;;  %v1328_v4 = vpop.xlane.xlu1 %1327 }
 0x367   : > { %v1378_v7 = vsub.f32 %v4115_v12, %v1340_v57  ;;  %v1334_v31 = vmax.f32 %v1332_v23, %v1333_v50  ;;  %v1351_v22 = vrot.slane %v1350_v62, 1  ;;  %v1344_v25 = vmax.f32 %v1342_v51, %v1343_v2 }
 0x368   : > { %v1361_v61 = vrot.slane %v1360_v15, 2  ;;  %v1354_v46 = vmax.f32 %v1319_v52, %v1353_v29  ;;  %v1371_v55 = vrot.slane %v1328_v4, 4  ;;  %v1325_v28 = vpop.xlane.xlu0 %1324 }
 0x369   : > { %v1387_v43 = vmul.f32 1.442695, %v1378_v7  ;;  %v1377_v33 = vsub.f32 %v4121_v54, %v1334_v31  ;;  %v1352_v36 = vmax.f32 %v1350_v62, %v1351_v22  ;;  %v1345_v60 = vrot.slane %v1344_v25, 1 }
 0x36a   : > { %v1362_v37 = vmax.f32 %v1360_v15, %v1361_v61  ;;  %v1355_v47 = vrot.slane %v1354_v46, 2  ;;  %v1372_v20 = vmax.f32 %v1328_v4, %v1371_v55  ;;  %v1365_v6 = vrot.slane %v1325_v28, 4 }
 0x36b   : > { %3429 = vpow2.f32 %v1387_v43  ;;  %v1385_v5 = vmul.f32 1.442695, %v1377_v33  ;;  %v1380_v12 = vsub.f32 %v4127_v59, %v1352_v36  ;;  %v1346_v44 = vmax.f32 %v1344_v25, %v1345_v60  ;;  %v1851_v23 = vpop.xlane.xlu1 %1850 }
 0x36c   : > { %v1363_v49 = vrot.slane %v1362_v37, 1  ;;  %v1356_v51 = vmax.f32 %v1354_v46, %v1355_v47  ;;  %v1373_v53 = vrot.slane %v1372_v20, 2  ;;  %v1366_v52 = vmax.f32 %v1325_v28, %v1365_v6 }
 0x36d   : > { %3431 = vpow2.f32 %v1385_v5  ;;  %v1391_v57 = vmul.f32 1.442695, %v1380_v12  ;;  %v1379_v54 = vsub.f32 %v4133_v3, %v1346_v44  ;;  %v1876_v50 = vrot.slane %v1851_v23, 4  ;;  %v1848_v62 = vpop.xlane.xlu0 %1847 }
 0x36e   : > { %v1364_v2 = vmax.f32 %v1362_v37, %v1363_v49  ;;  %v1357_v15 = vrot.slane %v1356_v51, 1  ;;  %v1374_v29 = vmax.f32 %v1372_v20, %v1373_v53  ;;  %v1367_v4 = vrot.slane %v1366_v52, 2 }
 0x36f   : > { %3433 = vpow2.f32 %v1391_v57  ;;  %v1389_v7 = vmul.f32 1.442695, %v1379_v54  ;;  %v1877_v31 = vmax.f32 %v1851_v23, %v1876_v50  ;;  %v1870_v59 = vrot.slane %v1848_v62, 4  ;;  %v1857_v22 = vpop.xlane.xlu1 %1856 }
 0x370   : > { %v1382_v25 = vsub.f32 %v4139_v9, %v1364_v2  ;;  %v1358_v61 = vmax.f32 %v1356_v51, %v1357_v15  ;;  %v1375_v46 = vrot.slane %v1374_v29, 1  ;;  %v1368_v55 = vmax.f32 %v1366_v52, %v1367_v4 }
 0x371   : > { %3435 = vpow2.f32 %v1389_v7  ;;  %v1878_v28 = vrot.slane %v1877_v31, 2  ;;  %v1871_v43 = vmax.f32 %v1848_v62, %v1870_v59  ;;  %v1888_v3 = vrot.slane %v1857_v22, 4  ;;  %v1854_v33 = vpop.xlane.xlu0 %1853 }
 0x372   : > { %v1395_v36 = vmul.f32 1.442695, %v1382_v25  ;;  %v1381_v60 = vsub.f32 %v4145_v11, %v1358_v61  ;;  %v1376_v37 = vmax.f32 %v1374_v29, %v1375_v46  ;;  %v1369_v47 = vrot.slane %v1368_v55, 1 }
 0x373   : > { %v1879_v20 = vmax.f32 %v1877_v31, %v1878_v28  ;;  %v1872_v6 = vrot.slane %v1871_v43, 2  ;;  %v1889_v5 = vmax.f32 %v1857_v22, %v1888_v3  ;;  %v1882_v12 = vrot.slane %v1854_v33, 4  ;;  %v1863_v44 = vpop.xlane.xlu1 %1862 }
 0x374   : > { %3437 = vpow2.f32 %v1395_v36  ;;  %v1393_v9 = vmul.f32 1.442695, %v1381_v60  ;;  %v1384_v23 = vsub.f32 %v4151_v26, %v1376_v37  ;;  %v1370_v49 = vmax.f32 %v1368_v55, %v1369_v47 }
 0x375   : > { %v1880_v51 = vrot.slane %v1879_v20, 1  ;;  %v1873_v53 = vmax.f32 %v1871_v43, %v1872_v6  ;;  %v1890_v52 = vrot.slane %v1889_v5, 2  ;;  %v1883_v57 = vmax.f32 %v1854_v33, %v1882_v12  ;;  %v1860_v54 = vpop.xlane.xlu0 %1859 }
 0x376   : > { %3439 = vpow2.f32 %v1393_v9  ;;  %v1399_v50 = vmul.f32 1.442695, %v1384_v23  ;;  %v1383_v11 = vsub.f32 %v4156_v32, %v1370_v49  ;;  %v1900_v62 = vrot.slane %v1863_v44, 4 }
 0x377   : > { %v1881_v2 = vmax.f32 %v1879_v20, %v1880_v51  ;;  %v1874_v15 = vrot.slane %v1873_v53, 1  ;;  %v1891_v29 = vmax.f32 %v1889_v5, %v1890_v52  ;;  %v1884_v4 = vrot.slane %v1883_v57, 2  ;;  %v1869_v7 = vpop.xlane.xlu1 %1868 }
 0x378   : > { %v3430_v31 = vpop.eup %3429  ;;  %3441 = vpow2.f32 %v1399_v50  ;;  %v1397_v59 = vmul.f32 1.442695, %v1383_v11  ;;  %v1901_v26 = vmax.f32 %v1863_v44, %v1900_v62  ;;  %v1894_v22 = vrot.slane %v1860_v54, 4 }
 0x379   : > { %v1919_v25 = vsub.f32 %v4163_v41, %v1881_v2  ;;  %v1875_v61 = vmax.f32 %v1873_v53, %v1874_v15  ;;  %v1892_v46 = vrot.slane %v1891_v29, 1  ;;  %v1885_v55 = vmax.f32 %v1883_v57, %v1884_v4  ;;  %v1866_v28 = vpop.xlane.xlu0 %1865 }
 0x37a   : > { %v3432_v43 = vpop.eup %3431  ;;  %3443 = vpow2.f32 %v1397_v59  ;;  %v1902_v32 = vrot.slane %v1901_v26, 2  ;;  %v1895_v3 = vmax.f32 %v1860_v54, %v1894_v22  ;;  %v1912_v33 = vrot.slane %v1869_v7, 4 }
 0x37b   : > { %v1928_v36 = vmul.f32 1.442695, %v1919_v25  ;;  %v1918_v60 = vsub.f32 %v4169_v48, %v1875_v61  ;;  %v1893_v37 = vmax.f32 %v1891_v29, %v1892_v46  ;;  %v1886_v47 = vrot.slane %v1885_v55, 1  ;;  %3247 = vmatprep.mubr.msk.f32.mxu0 %vm474_vm1, %v3432_v43 }
 0x37c   : > { %v3434_v20 = vpop.eup %3433  ;;  %v1903_v6 = vmax.f32 %v1901_v26, %v1902_v32  ;;  %v1896_v5 = vrot.slane %v1895_v3, 2  ;;  %v1913_v41 = vmax.f32 %v1869_v7, %v1912_v33  ;;  %v1906_v12 = vrot.slane %v1866_v28, 4  ;;  %3248 = vmatmul.mubr.msk.f32.vlgmr.msra.gmra.mxu0 %vm474_vm1, %v3430_v31 }
 0x37d   : > { %3445 = vpow2.f32 %v1928_v36  ;;  %v1926_v44 = vmul.f32 1.442695, %v1918_v60  ;;  %v1921_v9 = vsub.f32 %v4175_v56, %v1893_v37  ;;  %v1887_v23 = vmax.f32 %v1885_v55, %v1886_v47 }
 0x37e   : > { %v3436_v49 = vpop.eup %3435  ;;  %v1904_v51 = vrot.slane %v1903_v6, 1  ;;  %v1897_v53 = vmax.f32 %v1895_v3, %v1896_v5  ;;  %v1914_v48 = vrot.slane %v1913_v41, 2  ;;  %v1907_v52 = vmax.f32 %v1866_v28, %v1906_v12  ;;  %v2391_v57 = vpop.xlane.xlu1 %2390 }
 0x37f   : > { %3447 = vpow2.f32 %v1926_v44  ;;  %v1932_v54 = vmul.f32 1.442695, %v1921_v9  ;;  %v1920_v50 = vsub.f32 %v4181_v63, %v1887_v23  ;;  %v1404_v11 = vsel %vm474_vm1, %v3430_v31, 0.0  ;;  %3250 = vmatprep.mubr.msk.f32.mxu0 %vm474_vm1, %v3436_v49 }
 0x380   : > { %v4322_v62 = vmax.f32 %v1903_v6, %v1904_v51  ;;  %v1898_v2 = vrot.slane %v1897_v53, 1  ;;  %v1915_v15 = vmax.f32 %v1913_v41, %v1914_v48  ;;  %v1908_v56 = vrot.slane %v1907_v52, 2  ;;  %1405 = vadd.xlane.f32.xlu0 %v1404_v11  ;;  %v2388_v29 = vpop.xlane.xlu0 %2387  ;;  %3251 = vmatmul.mubr.msk.f32.gmra.mxu0 %vm474_vm1, %v3434_v20 }
 0x381   : > { %v3438_v4 = vpop.eup %3437  ;;  %v1401_v7 = vsel %vm474_vm1, %v3432_v43, 0.0  ;;  %v2416_v59 = vrot.slane %v2391_v57, 4  ;;  %v1930_v26 = vmul.f32 1.442695, %v1920_v50  ;;  %3449 = vpow2.f32 %v1932_v54 }
 0x382   : > { %v1899_v22 = vmax.f32 %v1897_v53, %v1898_v2  ;;  %v1916_v63 = vrot.slane %v1915_v15, 1  ;;  %v1909_v25 = vmax.f32 %v1907_v52, %v1908_v56  ;;  %1402 = vadd.xlane.f32.xlu1 %v1401_v7  ;;  %v2397_v31 = vpop.xlane.xlu1 %2396  ;;  %v1410_v55 = vsel %vm474_vm1, %v3434_v20, 0.0 }
 0x383   : > { %v3440_v61 = vpop.eup %3439  ;;  %v2417_v46 = vmax.f32 %v2391_v57, %v2416_v59  ;;  %v2410_v28 = vrot.slane %v2388_v29, 4  ;;  %v1923_v32 = vsub.f32 %v4187_v8, %v4322_v62  ;;  %v1407_v6 = vsel %vm474_vm1, %v3436_v49, 0.0 }
 0x384   : > { %v1922_v3 = vsub.f32 %v4193_v19, %v1899_v22  ;;  %v1917_v33 = vmax.f32 %v1915_v15, %v1916_v63  ;;  %v1910_v43 = vrot.slane %v1909_v25, 1  ;;  %1411 = vadd.xlane.f32.xlu0 %v1410_v55  ;;  %3253 = vmatprep.mubr.msk.f32.mxu0 %vm474_vm1, %v3440_v61  ;;  %v2394_v36 = vpop.xlane.xlu0 %2393  ;;  %v2428_v5 = vrot.slane %v2397_v31, 4 }
 0x385   : > { %v3442_v60 = vpop.eup %3441  ;;  %v2418_v37 = vrot.slane %v2417_v46, 2  ;;  %v2411_v47 = vmax.f32 %v2388_v29, %v2410_v28  ;;  %3254 = vmatmul.mubr.msk.f32.gmra.mxu0 %vm474_vm1, %v3438_v4  ;;  %3451 = vpow2.f32 %v1930_v26  ;;  %v2422_v23 = vrot.slane %v2394_v36, 4 }
 0x386   : > { %v1934_v20 = vmul.f32 1.442695, %v1922_v3  ;;  %v1925_v8 = vsub.f32 %v4199_v30, %v1917_v33  ;;  %v1911_v41 = vmax.f32 %v1909_v25, %v1910_v43  ;;  %1408 = vadd.xlane.f32.xlu1 %v1407_v6  ;;  %v2429_v9 = vmax.f32 %v2397_v31, %v2428_v5 }
 0x387   : > { %v3444_v19 = vpop.eup %3443  ;;  %v2419_v12 = vmax.f32 %v2417_v46, %v2418_v37  ;;  %v2412_v44 = vrot.slane %v2411_v47, 2  ;;  %v1416_v49 = vsel %vm474_vm1, %v3438_v4, 0.0  ;;  %v2423_v30 = vmax.f32 %v2394_v36, %v2422_v23 }
 0x388   : > { %3453 = vpow2.f32 %v1934_v20  ;;  %v1940_v51 = vmul.f32 1.442695, %v1925_v8  ;;  %v1924_v53 = vsub.f32 %v4204_v39, %v1911_v41  ;;  %3256 = vmatprep.mubr.msk.f32.mxu0 %vm474_vm1, %v3444_v19  ;;  %v2403_v48 = vpop.xlane.xlu0 %2402  ;;  %v2430_v54 = vrot.slane %v2429_v9, 2 }
 0x389   : > { %v2420_v52 = vrot.slane %v2419_v12, 1  ;;  %v2413_v57 = vmax.f32 %v2411_v47, %v2412_v44  ;;  %3257 = vmatmul.mubr.msk.f32.gmra.mxu0 %vm474_vm1, %v3442_v60  ;;  %v1413_v62 = vsel %vm474_vm1, %v3440_v61, 0.0  ;;  %v2440_v2 = vrot.slane %v2403_v48, 4 }
 0x38a   : > { %v4338_v50 = vpop.eup %3445  ;;  %3455 = vpow2.f32 %v1940_v51  ;;  %v1938_v11 = vmul.f32 1.442695, %v1924_v53  ;;  %1417 = vadd.xlane.f32.xlu1 %v1416_v49  ;;  %v2431_v56 = vmax.f32 %v2429_v9, %v2430_v54  ;;  %v2424_v29 = vrot.slane %v2423_v30, 2  ;;  %1414 = vadd.xlane.f32.xlu0 %v1413_v62 }
 0x38b   : > { %v2421_v39 = vmax.f32 %v2419_v12, %v2420_v52  ;;  %v2414_v15 = vrot.slane %v2413_v57, 1  ;;  %v1936_v7 = vmul.f32 1.442695, %v1923_v32  ;;  %v2441_v59 = vmax.f32 %v2403_v48, %v2440_v2 }
 0x38c   : > { %v3448_v4 = vpop.eup %3447  ;;  %v1422_v26 = vsel %vm474_vm1, %v3442_v60, 0.0  ;;  %v1419_v22 = vsel %vm474_vm1, %v3444_v19, 0.0  ;;  %v2400_v63 = vpop.xlane.xlu0 %2399  ;;  %v2432_v46 = vrot.slane %v2431_v56, 1  ;;  %v2425_v55 = vmax.f32 %v2423_v30, %v2424_v29 }
 0x38d   : > { %v2459_v25 = vsub.f32 %v4213_v10, %v2421_v39  ;;  %v2415_v31 = vmax.f32 %v2413_v57, %v2414_v15  ;;  %3275 = vmatprep.mubr.msk.f32.mxu0 %vm474_vm1, %v3448_v4  ;;  %3457 = vpow2.f32 %v1938_v11  ;;  %v2442_v61 = vrot.slane %v2441_v59, 2 }
 0x38e   : > { %1423 = vadd.xlane.f32.xlu1 %v1422_v26  ;;  %v2434_v28 = vrot.slane %v2400_v63, 4  ;;  %v2433_v32 = vmax.f32 %v2431_v56, %v2432_v46  ;;  %v2426_v33 = vrot.slane %v2425_v55, 1  ;;  %1420 = vadd.xlane.f32.xlu0 %v1419_v22  ;;  %v4346_v43 = vpop.eup %3449  ;;  %3459 = vpow2.f32 %v1936_v7  ;;  %v2555_v22 = vpop.permute.xlu1 %2554 }
 0x38f   : > { %v2458_v3 = vsub.f32 %v4220_v34, %v2415_v31  ;;  %v2443_v36 = vmax.f32 %v2441_v59, %v2442_v61  ;;  %v1945_v10 = vsel %vm474_vm1, %v4338_v50, 0.0  ;;  %v2468_v47 = vmul.f32 1.442695, %v2459_v25 }
 0x390   : > { %v2435_v60 = vmax.f32 %v2400_v63, %v2434_v28  ;;  %v2409_v37 = vpop.xlane.xlu0 %2408  ;;  %v2461_v5 = vsub.f32 %v4226_v45, %v2433_v32  ;;  %v2427_v20 = vmax.f32 %v2425_v55, %v2426_v33  ;;  %v1942_v51 = vsel %vm474_vm1, %v3448_v4, 0.0 }
 0x391   : > { %v2466_v6 = vmul.f32 1.442695, %v2458_v3  ;;  %v2444_v8 = vrot.slane %v2443_v36, 1  ;;  %v2452_v34 = vrot.slane %v2409_v37, 4  ;;  %v1951_v4 = vsel %vm474_vm1, %v4346_v43, 0.0 }
 0x392   : > { %v2436_v41 = vrot.slane %v2435_v60, 2  ;;  %1946 = vadd.xlane.f32.xlu1 %v1945_v10  ;;  %v3452_v19 = vpop.eup %3451  ;;  %v2460_v12 = vsub.f32 %v4232_v58, %v2427_v20  ;;  %v2472_v48 = vmul.f32 1.442695, %v2461_v5 }
 0x393   : > { %3461 = vpow2.f32 %v2466_v6  ;;  %v2445_v44 = vmax.f32 %v2443_v36, %v2444_v8  ;;  %v2453_v23 = vmax.f32 %v2409_v37, %v2452_v34  ;;  %v1948_v55 = vsel %vm474_vm1, %v3452_v19, 0.0 }
 0x394   : > { %v2437_v9 = vmax.f32 %v2435_v60, %v2436_v41  ;;  %v2406_v53 = vpop.xlane.xlu0 %2405  ;;  %3463 = vpow2.f32 %v2468_v47  ;;  %v2470_v52 = vmul.f32 1.442695, %v2460_v12 }
 0x395   : > { %v3454_v49 = vpop.eup %3453  ;;  %v2446_v45 = vrot.slane %v2406_v53, 4  ;;  %v2463_v57 = vsub.f32 %v4239_v17, %v2445_v44  ;;  %v2454_v30 = vrot.slane %v2453_v23, 2 }
 0x396   : > { %v2438_v54 = vrot.slane %v2437_v9, 1  ;;  %1943 = vadd.xlane.f32.xlu1 %v1942_v51  ;;  %v1954_v11 = vsel %vm474_vm1, %v3454_v49, 0.0  ;;  %3465 = vpow2.f32 %v2470_v52  ;;  %v870_v51 = vsel %vm474_vm1, %v4275_v16, 0.0  ;;  %v4410_v16 = vpop.permute.xlu1 %1606 }
 0x397   : > { %v3456_v62 = vpop.eup %3455  ;;  %v2447_v58 = vmax.f32 %v2406_v53, %v2446_v45  ;;  %1955 = vadd.xlane.f32.xlu0 %v1954_v11  ;;  %v2476_v2 = vmul.f32 1.442695, %v2463_v57  ;;  %v2455_v15 = vmax.f32 %v2453_v23, %v2454_v30  ;;  %3467 = vpow2.f32 %v2472_v48 }
 0x398   : > { %v2439_v39 = vmax.f32 %v2437_v9, %v2438_v54  ;;  %v2015_v56 = vpop.permute.xlu0 %2014  ;;  %v1963_v59 = vsel %vm474_vm1, %v3456_v62, 0.0  ;;  %v867_v9 = vsel %vm474_vm1, %v4266_v24, 0.0  ;;  %v864_v23 = vsel %vm474_vm1, %v4264_v14, 0.0 }
 0x399   : > { %v2448_v29 = vrot.slane %v2447_v58, 2  ;;  %3273 = vmatprep.subr.mxu0 %v2015_v56  ;;  %v2456_v7 = vrot.slane %v2455_v15, 1  ;;  %3469 = vpow2.f32 %v2476_v2  ;;  %v873_v53 = vsel %vm474_vm1, %v4286_v13, 0.0 }
 0x39a   : > { %v2462_v17 = vsub.f32 %v4246_v1, %v2439_v39  ;;  %1952 = vadd.xlane.f32.xlu1 %v1951_v4  ;;  %3274 = vmatpush3.msra.mxu0 %v2015_v56  ;;  %v3458_v26 = vpop.eup %3457  ;;  %v879_v24 = vsel %vm474_vm1, %v4294_v38, 0.0  ;;  %v882_v48 = vsel %vm474_vm1, %v4296_v27, 0.0  ;;  %v885_v14 = vsel %vm474_vm1, %v4302_v40, 0.0 }
 0x39b   : > { %v2449_v63 = vmax.f32 %v2447_v58, %v2448_v29  ;;  %1964 = vadd.xlane.f32.xlu0 %v1963_v59  ;;  %3276 = vmatmul.mubr.msk.f32.vlgmr.msra.gmra.mxu0 %vm474_vm1, %v4338_v50  ;;  %v2457_v31 = vmax.f32 %v2455_v15, %v2456_v7  ;;  %v3460_v46 = vpop.eup %3459  ;;  %v1960_v28 = vsel %vm474_vm1, %v3458_v26, 0.0 }
 0x39c   : > { %v2474_v25 = vmul.f32 1.442695, %v2462_v17  ;;  %3301 = vmatprep.subr.mxu0 %v2555_v22  ;;  %3278 = vmatprep.mubr.msk.f32.mxu0 %vm474_vm1, %v3452_v19  ;;  %v1957_v36 = vsel %vm474_vm1, %v3460_v46, 0.0 }
 0x39d   : > { %v2450_v1 = vrot.slane %v2449_v63, 1  ;;  %3302 = vmatpush3.msra.mxu0 %v2555_v22  ;;  %v2465_v61 = vsub.f32 %v4253_v35, %v2457_v31 }
 0x39e   : > { %3471 = vpow2.f32 %v2474_v25  ;;  %1949 = vadd.xlane.f32.xlu1 %v1948_v55 }
 0x39f   : > { %v2451_v3 = vmax.f32 %v2449_v63, %v2450_v1  ;;  %1961 = vadd.xlane.f32.xlu0 %v1960_v28  ;;  %3279 = vmatmul.mubr.msk.f32.gmra.mxu0 %vm474_vm1, %v4346_v43  ;;  %v2480_v32 = vmul.f32 1.442695, %v2465_v61 }
 0x3a0   : > { %v3462_v50 = vpop.eup %3461  ;;  %3281 = vmatprep.mubr.msk.f32.mxu0 %vm474_vm1, %v3454_v49  ;;  %v876_v49 = vsel %vm474_vm1, %v4288_v21, 0.0 }
 0x3a1   : > { %v2464_v33 = vsub.f32 %v4258_v42, %v2451_v3  ;;  %v2482_v60 = vsel %vm474_vm1, %v3462_v50, 0.0  ;;  %v3464_v10 = vpop.eup %3463  ;;  %3473 = vpow2.f32 %v2480_v32 }
 0x3a2   : > { %1958 = vadd.xlane.f32.xlu1 %v1957_v36  ;;  %v2485_v43 = vsel %vm474_vm1, %v3464_v10, 0.0 }
 0x3a3   : > { %v2478_v35 = vmul.f32 1.442695, %v2464_v33  ;;  %2483 = vadd.xlane.f32.xlu0 %v2482_v60  ;;  %3282 = vmatmul.mubr.msk.f32.gmra.mxu0 %vm474_vm1, %v3460_v46  ;;  %v3466_v37 = vpop.eup %3465 }
 0x3a4   : > { %3284 = vmatprep.mubr.msk.f32.mxu0 %vm474_vm1, %v3458_v26  ;;  %v2488_v47 = vsel %vm474_vm1, %v3466_v37, 0.0  ;;  %v3468_v42 = vpop.eup %3467 }
 0x3a5   : > { %3475 = vpow2.f32 %v2478_v35  ;;  %v2491_v5 = vsel %vm474_vm1, %v3468_v42, 0.0 }
 0x3a6   : > { %2486 = vadd.xlane.f32.xlu1 %v2485_v43  ;;  %v3470_v6 = vpop.eup %3469 }
 0x3a7   : > { %2489 = vadd.xlane.f32.xlu0 %v2488_v47  ;;  %3285 = vmatmul.mubr.msk.f32.gmra.mxu0 %vm474_vm1, %v3456_v62  ;;  %v2497_v8 = vsel %vm474_vm1, %v3470_v6, 0.0 }
 0x3a8   : > { %3303 = vmatprep.mubr.msk.f32.mxu0 %vm474_vm1, %v3462_v50 }
 0x3aa   : > { %2492 = vadd.xlane.f32.xlu1 %v2491_v5 }
 0x3ab   : > { %v3472_v20 = vpop.eup %3471  ;;  %3304 = vmatmul.mubr.msk.f32.vlgmr.msra.gmra.mxu0 %vm474_vm1, %v3464_v10 }
 0x3ac   : > { %v2494_v41 = vsel %vm474_vm1, %v3472_v20, 0.0  ;;  %3306 = vmatprep.mubr.msk.f32.mxu0 %vm474_vm1, %v3466_v37 }
 0x3ad   : > { %2495 = vadd.xlane.f32.xlu0 %v2494_v41 }
 0x3ae   : > { %2498 = vadd.xlane.f32.xlu1 %v2497_v8  ;;  %v3474_v34 = vpop.eup %3473 }
 0x3af   : > { %3307 = vmatmul.mubr.msk.f32.gmra.mxu0 %vm474_vm1, %v3468_v42  ;;  %v2503_v19 = vsel %vm474_vm1, %v3474_v34, 0.0 }
 0x3b0   : > { %3309 = vmatprep.mubr.msk.f32.mxu0 %vm474_vm1, %v3472_v20 }
 0x3b1   : > { %2504 = vadd.xlane.f32.xlu0 %v2503_v19 }
 0x3b2   : > { %v3476_v12 = vpop.eup %3475 }
 0x3b3   : > { %3310 = vmatmul.mubr.msk.f32.gmra.mxu0 %vm474_vm1, %v3470_v6  ;;  %v2500_v44 = vsel %vm474_vm1, %v3476_v12, 0.0 }
 0x3b4   : > { %2501 = vadd.xlane.f32.xlu1 %v2500_v44  ;;  %3312 = vmatprep.mubr.msk.f32.mxu0 %vm474_vm1, %v3476_v12 }
 0x3b7   : > { %3313 = vmatmul.mubr.msk.f32.gmra.mxu0 %vm474_vm1, %v3474_v34 }
 0x3c5   : > { %2686 = vrot.lane.b32.xlu1 %v3892_v18, %s3710_s11 }
 0x3c7   : > { %2146 = vrot.lane.b32.xlu0 %v3892_v18, %s3711_s23 }
 0x3ce   : > { %v4412_v45 = vpop.f32.mrf.mxu0 }
 0x3d0   : > { %v4414_v54 = vpop.f32.mrf.mxu0 }
 0x3e6   : > { %868 = vadd.xlane.f32.xlu0 %v867_v9 }
 0x3e9   : > { %865 = vadd.xlane.f32.xlu1 %v864_v23 }
 0x3ea   : > { %871 = vadd.xlane.f32.xlu0 %v870_v51 }
 0x3ed   : > { %874 = vadd.xlane.f32.xlu1 %v873_v53 }
 0x3ee   : > { %877 = vadd.xlane.f32.xlu0 %v876_v49 }
 0x3f1   : > { %880 = vadd.xlane.f32.xlu1 %v879_v24 }
 0x3f2   : > { %883 = vadd.xlane.f32.xlu0 %v882_v48 }
 0x3f5   : > { %886 = vadd.xlane.f32.xlu1 %v885_v14 }
 0x402   : > { %v4416_v11 = vpop.f32.mrf.mxu0 }
 0x404   : > { %v4418_v56 = vpop.f32.mrf.mxu0 }
 0x406   : > { %v4420_v25 = vpop.f32.mrf.mxu0 }
 0x408   : > { %1065 = vrot.lane.b32.xlu0 %v3892_v18, %s3712_s27  ;;  %v4422_v36 = vpop.f32.mrf.mxu0 }
 0x409   : > { %v1406_v21 = vpop.xlane.xlu0 %1405 }
 0x40a   : > { %v1431_v27 = vrot.slane %v1406_v21, 4  ;;  %v4424_v20 = vpop.f32.mrf.mxu0 }
 0x40b   : > { %v1403_v13 = vpop.xlane.xlu1 %1402 }
 0x40c   : > { %v1425_v30 = vrot.slane %v1403_v13, 4  ;;  %v1432_v58 = vadd.f32 %v1431_v27, %v1406_v21  ;;  %v4426_v24 = vpop.f32.mrf.mxu0 }
 0x40d   : > { %v1412_v38 = vpop.xlane.xlu0 %1411 }
 0x40e   : > { %v1443_v40 = vrot.slane %v1412_v38, 4  ;;  %v1426_v18 = vadd.f32 %v1425_v30, %v1403_v13  ;;  %v1433_v17 = vrot.slane %v1432_v58, 2 }
 0x40f   : > { %v1409_v52 = vpop.xlane.xlu1 %1408 }
 0x410   : > { %v1437_v2 = vrot.slane %v1409_v52, 4  ;;  %v1444_v29 = vadd.f32 %v1443_v40, %v1412_v38  ;;  %v1427_v26 = vrot.slane %v1426_v18, 2  ;;  %v1434_v61 = vadd.f32 %v1433_v17, %v1432_v58 }
 0x412   : > { %v1438_v7 = vadd.f32 %v1437_v2, %v1409_v52  ;;  %v1445_v31 = vrot.slane %v1444_v29, 2  ;;  %v1428_v3 = vadd.f32 %v1427_v26, %v1426_v18  ;;  %v1435_v37 = vrot.slane %v1434_v61, 1 }
 0x413   : > { %v1418_v57 = vpop.xlane.xlu1 %1417  ;;  %v1415_v62 = vpop.xlane.xlu0 %1414 }
 0x414   : > { %v1455_v39 = vrot.slane %v1418_v57, 4  ;;  %v1449_v4 = vrot.slane %v1415_v62, 4  ;;  %v1439_v28 = vrot.slane %v1438_v7, 2  ;;  %v1446_v33 = vadd.f32 %v1445_v31, %v1444_v29 }
 0x415   : > { %v1429_v47 = vrot.slane %v1428_v3, 1  ;;  %v1436_v12 = vadd.f32 %v1435_v37, %v1434_v61 }
 0x416   : > { %v1456_v22 = vadd.f32 %v1455_v39, %v1418_v57  ;;  %v1450_v46 = vadd.f32 %v1449_v4, %v1415_v62  ;;  %v1440_v43 = vadd.f32 %v1439_v28, %v1438_v7  ;;  %v1447_v5 = vrot.slane %v1446_v33, 1 }
 0x417   : > { %v1424_v15 = vpop.xlane.xlu1 %1423  ;;  %v1421_v59 = vpop.xlane.xlu0 %1420  ;;  %v1430_v9 = vadd.f32 %v1429_v47, %v1428_v3  ;;  %3477 = vrcp.f32 %v1436_v12 }
 0x418   : > { %v1467_v63 = vrot.slane %v1424_v15, 4  ;;  %v1461_v1 = vrot.slane %v1421_v59, 4  ;;  %v1457_v50 = vrot.slane %v1456_v22, 2  ;;  %v1451_v10 = vrot.slane %v1450_v46, 2 }
 0x419   : > { %v1441_v44 = vrot.slane %v1440_v43, 1  ;;  %v1448_v49 = vadd.f32 %v1447_v5, %v1446_v33  ;;  %3479 = vrcp.f32 %v1430_v9 }
 0x41a   : > { %v1468_v32 = vadd.f32 %v1467_v63, %v1424_v15  ;;  %v1462_v35 = vadd.f32 %v1461_v1, %v1421_v59  ;;  %v1458_v42 = vadd.f32 %v1457_v50, %v1456_v22  ;;  %v1452_v41 = vadd.f32 %v1451_v10, %v1450_v46 }
 0x41b   : > { %v1947_v55 = vpop.xlane.xlu1 %1946  ;;  %v1442_v52 = vadd.f32 %v1441_v44, %v1440_v43  ;;  %3481 = vrcp.f32 %v1448_v49 }
 0x41c   : > { %v1972_v60 = vrot.slane %v1947_v55, 4  ;;  %v1469_v6 = vrot.slane %v1468_v32, 2  ;;  %v1463_v34 = vrot.slane %v1462_v35, 2  ;;  %v1459_v23 = vrot.slane %v1458_v42, 1 }
 0x41d   : > { %v1453_v13 = vrot.slane %v1452_v41, 1  ;;  %3483 = vrcp.f32 %v1442_v52 }
 0x41e   : > { %v1973_v8 = vadd.f32 %v1972_v60, %v1947_v55  ;;  %v1470_v51 = vadd.f32 %v1469_v6, %v1468_v32  ;;  %v1464_v21 = vadd.f32 %v1463_v34, %v1462_v35  ;;  %v1460_v27 = vadd.f32 %v1459_v23, %v1458_v42 }
 0x41f   : > { %v1944_v19 = vpop.xlane.xlu1 %1943  ;;  %v1454_v18 = vadd.f32 %v1453_v13, %v1452_v41 }
 0x420   : > { %v1956_v53 = vpop.xlane.xlu0 %1955  ;;  %v1974_v48 = vrot.slane %v1973_v8, 2  ;;  %v1966_v14 = vrot.slane %v1944_v19, 4  ;;  %v1471_v30 = vrot.slane %v1470_v51, 1  ;;  %v1465_v39 = vrot.slane %v1464_v21, 1 }
 0x421   : > { %v1990_v38 = vrot.slane %v1956_v53, 4  ;;  %3485 = vrcp.f32 %v1460_v27 }
 0x422   : > { %v1975_v62 = vadd.f32 %v1974_v48, %v1973_v8  ;;  %v1967_v58 = vadd.f32 %v1966_v14, %v1944_v19  ;;  %v1472_v26 = vadd.f32 %v1471_v30, %v1470_v51  ;;  %3487 = vrcp.f32 %v1454_v18 }
 0x423   : > { %v1991_v17 = vadd.f32 %v1990_v38, %v1956_v53  ;;  %v1953_v22 = vpop.xlane.xlu1 %1952  ;;  %v1466_v3 = vadd.f32 %v1465_v39, %v1464_v21 }
 0x424   : > { %v1965_v15 = vpop.xlane.xlu0 %1964  ;;  %v1976_v46 = vrot.slane %v1975_v62, 1  ;;  %v1968_v1 = vrot.slane %v1967_v58, 2  ;;  %v1984_v33 = vrot.slane %v1953_v22, 4  ;;  %3489 = vrcp.f32 %v1472_v26  ;;  %v3478_v14 = vpop.eup %3477 }
 0x425   : > { %v1992_v60 = vrot.slane %v1991_v17, 2  ;;  %v2008_v37 = vrot.slane %v1965_v15, 4  ;;  %3491 = vrcp.f32 %v1466_v3 }
 0x426   : > { %v1977_v5 = vadd.f32 %v1976_v46, %v1975_v62  ;;  %v4438_v8 = vadd.f32 %v1968_v1, %v1967_v58  ;;  %v4443_v51 = vadd.f32 %v1984_v33, %v1953_v22  ;;  %v3480_v27 = vpop.eup %3479 }
 0x427   : > { %v4440_v19 = vpop.xlane.xlu1 %1949  ;;  %v4445_v53 = vadd.f32 %v1992_v60, %v1991_v17  ;;  %v4447_v13 = vadd.f32 %v2008_v37, %v1965_v15 }
 0x428   : > { %v4435_v43 = vpop.xlane.xlu0 %1961  ;;  %3493 = vrcp.f32 %v1977_v5  ;;  %v1970_v30 = vrot.slane %v4438_v8, 1  ;;  %v4452_v58 = vpop.eup %3481  ;;  %v1986_v17 = vrot.slane %v4443_v51, 2 }
 0x429   : > { %v1994_v33 = vrot.slane %v4445_v53, 1 }
 0x42a   : > { %v3484_v22 = vpop.eup %3483 }
 0x43c   : > { %v3249_v57 = vpop.f32.mrf.mxu0 }
 0x43d   : > { %v1610_v40 = vmul.f32 %v3249_v57, %v4410_v16 }
 0x43e   : > { %v1567_v2 = vpop.f32.mrf.mxu0 }
 0x43f   : > { %v1624_v29 = vsel %vm474_vm1, %v1610_v40, 0.0  ;;  %v1609_v4 = vmul.f32 %v4410_v16, %v1567_v2  ;;  %v4454_v2 = vpop.xlane.xlu0 %2483 }
 0x440   : > { %v1625_v7 = vrot.slane %v1624_v29, 4  ;;  %v3252_v59 = vpop.f32.mrf.mxu0 }
 0x441   : > { %v1617_v63 = vsel %vm474_vm1, %v1609_v4, 0.0  ;;  %v1612_v31 = vmul.f32 %v3252_v59, %v4410_v16 }
 0x442   : > { %v1626_v55 = vadd.f32 %v1625_v7, %v1624_v29  ;;  %v1618_v61 = vrot.slane %v1617_v63, 4  ;;  %v1577_v28 = vpop.f32.mrf.mxu0 }
 0x443   : > { %v1638_v50 = vsel %vm474_vm1, %v1612_v31, 0.0  ;;  %v1611_v32 = vmul.f32 %v4410_v16, %v1577_v28  ;;  %v1959_v31 = vpop.xlane.xlu1 %1958 }
 0x444   : > { %v1627_v10 = vrot.slane %v1626_v55, 2  ;;  %v1619_v35 = vadd.f32 %v1618_v61, %v1617_v63  ;;  %v1639_v47 = vrot.slane %v1638_v50, 4  ;;  %v1978_v63 = vrot.slane %v4440_v19, 4  ;;  %v4462_v61 = vpop.eup %3485 }
 0x445   : > { %v1631_v42 = vsel %vm474_vm1, %v1611_v32, 0.0  ;;  %v3255_v6 = vpop.f32.mrf.mxu0  ;;  %v3488_v37 = vpop.eup %3487 }
 0x446   : > { %v1620_v41 = vrot.slane %v1619_v35, 2  ;;  %v1632_v34 = vrot.slane %v1631_v42, 4  ;;  %v1628_v12 = vadd.f32 %v1627_v10, %v1626_v55  ;;  %v1640_v44 = vadd.f32 %v1639_v47, %v1638_v50 }
 0x447   : > { %v1614_v9 = vmul.f32 %v3255_v6, %v4410_v16  ;;  %v1587_v23 = vpop.f32.mrf.mxu0 }
 0x448   : > { %v1621_v49 = vadd.f32 %v1620_v41, %v1619_v35  ;;  %v1633_v48 = vadd.f32 %v1632_v34, %v1631_v42  ;;  %v1641_v21 = vrot.slane %v1640_v44, 2  ;;  %v1613_v38 = vmul.f32 %v4410_v16, %v1587_v23  ;;  %v2490_v34 = vpop.xlane.xlu0 %2489  ;;  %v3490_v23 = vpop.eup %3489 }
 0x449   : > { %v1652_v52 = vsel %vm474_vm1, %v1614_v9, 0.0  ;;  %v3258_v57 = vpop.f32.mrf.mxu0  ;;  %v1629_v18 = vrot.slane %v1628_v12, 1  ;;  %v2002_v41 = vrot.slane %v4435_v43, 4 }
 0x44a   : > { %v1622_v40 = vrot.slane %v1621_v49, 1  ;;  %v1634_v62 = vrot.slane %v1633_v48, 2  ;;  %v1653_v39 = vrot.slane %v1652_v52, 4  ;;  %v1645_v15 = vsel %vm474_vm1, %v1613_v38, 0.0 }
 0x44b   : > { %v1616_v29 = vmul.f32 %v3258_v57, %v4410_v16  ;;  %v1597_v4 = vpop.f32.mrf.mxu0  ;;  %v1642_v7 = vadd.f32 %v1641_v21, %v1640_v44  ;;  %v1646_v26 = vrot.slane %v1645_v15, 4  ;;  %v1630_v60 = vadd.f32 %v1629_v18, %v1628_v12  ;;  %v3492_v18 = vpop.eup %3491 }
 0x44c   : > { %v1635_v59 = vadd.f32 %v1634_v62, %v1633_v48  ;;  %v1654_v46 = vadd.f32 %v1653_v39, %v1652_v52  ;;  %v1615_v55 = vmul.f32 %v4410_v16, %v1597_v4  ;;  %v1623_v28 = vadd.f32 %v1622_v40, %v1621_v49  ;;  %v2487_v52 = vpop.xlane.xlu1 %2486 }
 0x44d   : > { %v1666_v1 = vsel %vm474_vm1, %v1616_v29, 0.0  ;;  %v1647_v50 = vadd.f32 %v1646_v26, %v1645_v15  ;;  %v1643_v47 = vrot.slane %v1642_v7, 1  ;;  %v2010_v16 = vrot.slane %v4447_v13, 2 }
 0x44e   : > { %v1636_v3 = vrot.slane %v1635_v59, 1  ;;  %v1667_v32 = vrot.slane %v1666_v1, 4  ;;  %v1655_v10 = vrot.slane %v1654_v46, 2  ;;  %v1659_v35 = vsel %vm474_vm1, %v1615_v55, 0.0 }
 0x44f   : > { %v1648_v6 = vrot.slane %v1647_v50, 2  ;;  %v1660_v9 = vrot.slane %v1659_v35, 4  ;;  %v1996_v49 = vrot.slane %v1959_v31, 4  ;;  %v1681_v12 = vmul.f32 %v3480_v27, %v1623_v28 }
 0x450   : > { %v1637_v42 = vadd.f32 %v1636_v3, %v1635_v59  ;;  %v1668_v5 = vadd.f32 %v1667_v32, %v1666_v1  ;;  %v1656_v44 = vadd.f32 %v1655_v10, %v1654_v46  ;;  %v2506_v38 = vrot.slane %v4454_v2, 4  ;;  %v4472_v46 = vpop.xlane.xlu0 %2495 }
 0x451   : > { %v1649_v48 = vadd.f32 %v1648_v6, %v1647_v50  ;;  %v1682_v57 = vmul.f32 %v3478_v14, %v1630_v60  ;;  %v1661_v62 = vadd.f32 %v1660_v9, %v1659_v35  ;;  %v1644_v39 = vadd.f32 %v1643_v47, %v1642_v7  ;;  %v4475_v7 = vpop.eup %3493  ;;  %v2493_v47 = vpop.xlane.xlu1 %2492 }
 0x452   : > { %v1669_v21 = vrot.slane %v1668_v5, 2  ;;  %v1683_v40 = vmul.f32 %v3484_v22, %v1637_v42  ;;  %v1657_v15 = vrot.slane %v1656_v44, 1  ;;  %v1971_v59 = vadd.f32 %v1970_v30, %v4438_v8 }
 0x453   : > { %v1650_v29 = vrot.slane %v1649_v48, 1  ;;  %v1979_v26 = vadd.f32 %v1978_v63, %v4440_v19  ;;  %v2003_v27 = vadd.f32 %v2002_v41, %v4435_v43  ;;  %v1662_v1 = vrot.slane %v1661_v62, 2 }
 0x454   : > { %v1670_v4 = vadd.f32 %v1669_v21, %v1668_v5  ;;  %v2512_v14 = vrot.slane %v2487_v52, 4  ;;  %v2800_v22 = vsel %vm2777_vm3, %v1682_v57, %v1681_v12  ;;  %v1997_v3 = vadd.f32 %v1996_v49, %v1959_v31 }
 0x455   : > { %v1651_v55 = vadd.f32 %v1650_v29, %v1649_v48  ;;  %v2507_v50 = vadd.f32 %v2506_v38, %v4454_v2  ;;  %v2801_v8 = vsel %vm2779_vm4, %v1683_v40, %v2800_v22  ;;  %v1663_v30 = vadd.f32 %v1662_v1, %v1661_v62 }
 0x456   : > { %v1671_v28 = vrot.slane %v1670_v4, 1  ;;  %v2518_v19 = vrot.slane %v2490_v34, 4  ;;  %v1684_v43 = vmul.f32 %v4452_v58, %v1644_v39  ;;  %v1658_v63 = vadd.f32 %v1657_v15, %v1656_v44  ;;  %v2505_v58 = vpop.xlane.xlu0 %2504  ;;  %v2499_v39 = vpop.xlane.xlu1 %2498 }
 0x457   : > { %v1685_v32 = vmul.f32 %v3488_v37, %v1651_v55  ;;  %v1987_v60 = vadd.f32 %v1986_v17, %v4443_v51  ;;  %v1995_v10 = vadd.f32 %v1994_v33, %v4445_v53  ;;  %v1980_v35 = vrot.slane %v1979_v26, 2 }
 0x458   : > { %v1664_v42 = vrot.slane %v1663_v30, 1  ;;  %v2004_v31 = vrot.slane %v2003_v27, 2  ;;  %v2513_v6 = vadd.f32 %v2512_v14, %v2487_v52  ;;  %v1672_v2 = vadd.f32 %v1671_v28, %v1670_v4 }
 0x459   : > { %v2802_v5 = vsel %vm2781_vm5, %v1684_v43, %v2801_v8  ;;  %v2011_v41 = vadd.f32 %v2010_v16, %v4447_v13  ;;  %v1998_v9 = vrot.slane %v1997_v3, 2  ;;  %v2508_v12 = vrot.slane %v2507_v50, 2 }
 0x45a   : > { %v1665_v44 = vadd.f32 %v1664_v42, %v1663_v30  ;;  %v2803_v49 = vsel %vm2783_vm6, %v1685_v32, %v2802_v5  ;;  %v2524_v51 = vrot.slane %v2493_v47, 4  ;;  %v2519_v17 = vadd.f32 %v2518_v19, %v2490_v34  ;;  %v4492_v1 = vpop.permute.xlu0 %2146 }
 0x45b   : > { %v3277_v37 = vpop.f32.mrf.mxu0  ;;  %v1686_v53 = vmul.f32 %v4462_v61, %v1658_v63  ;;  %3495 = vrcp.f32 %v1971_v59  ;;  %v1988_v33 = vrot.slane %v1987_v60, 1  ;;  %v1981_v48 = vadd.f32 %v1980_v35, %v1979_v26 }
 0x45c   : > { %v1687_v21 = vmul.f32 %v3492_v18, %v1665_v44  ;;  %v2005_v38 = vadd.f32 %v2004_v31, %v2003_v27  ;;  %v2514_v57 = vrot.slane %v2513_v6, 2  ;;  %v1688_v40 = vmul.f32 %v3490_v23, %v1672_v2 }
 0x45d   : > { %v2107_v52 = vpop.f32.mrf.mxu0  ;;  %v2804_v13 = vsel %vm2785_vm7, %v1686_v53, %v2803_v49  ;;  %v2012_v16 = vrot.slane %v2011_v41, 1  ;;  %v1999_v62 = vadd.f32 %v1998_v9, %v1997_v3  ;;  %v2530_v15 = vrot.slane %v4472_v46, 4 }
 0x45e   : > { %v2805_v34 = vsel %vm2787_vm8, %v1687_v21, %v2804_v13  ;;  %v2509_v4 = vadd.f32 %v2508_v12, %v2507_v50  ;;  %v2525_v61 = vadd.f32 %v2524_v51, %v2493_v47  ;;  %v2520_v59 = vrot.slane %v2519_v17, 2 }
 0x45f   : > { %v3280_v29 = vpop.f32.mrf.mxu0  ;;  %v2806_v26 = vsel %vm2789_vm9, %v1688_v40, %v2805_v34  ;;  %v1989_v18 = vadd.f32 %v1988_v33, %v1987_v60  ;;  %3497 = vrcp.f32 %v1995_v10  ;;  %v1982_v27 = vrot.slane %v1981_v48, 1 }
 0x460   : > { %2807 = vrot.lane.b32.xlu1 %v2806_v26, %s3710_s11  ;;  %v2006_v14 = vrot.slane %v2005_v38, 1  ;;  %v2515_v22 = vadd.f32 %v2514_v57, %v2513_v6  ;;  %v2536_v55 = vrot.slane %v2499_v39, 4  ;;  %v2150_v28 = vmul.f32 %v3277_v37, %v4492_v1  ;;  %v2502_v6 = vpop.xlane.xlu1 %2501 }
 0x461   : > { %v2117_v23 = vpop.f32.mrf.mxu0  ;;  %v2013_v3 = vadd.f32 %v2012_v16, %v2011_v41  ;;  %v2000_v8 = vrot.slane %v1999_v62, 1  ;;  %v2531_v50 = vadd.f32 %v2530_v15, %v4472_v46  ;;  %v2548_v30 = vrot.slane %v2505_v58, 4 }
 0x462   : > { %v2510_v43 = vrot.slane %v2509_v4, 1  ;;  %v2526_v63 = vrot.slane %v2525_v61, 2  ;;  %v2521_v32 = vadd.f32 %v2520_v59, %v2519_v17  ;;  %v2149_v60 = vmul.f32 %v4492_v1, %v2107_v52 }
 0x463   : > { %v3283_v19 = vpop.f32.mrf.mxu0  ;;  %3499 = vrcp.f32 %v1989_v18  ;;  %v1983_v10 = vadd.f32 %v1982_v27, %v1981_v48  ;;  %v2007_v47 = vadd.f32 %v2006_v14, %v2005_v38  ;;  %v2516_v42 = vrot.slane %v2515_v22, 1 }
 0x464   : > { %v2537_v31 = vadd.f32 %v2536_v55, %v2499_v39  ;;  %v2164_v2 = vsel %vm474_vm1, %v2150_v28, 0.0  ;;  %3501 = vrcp.f32 %v2013_v3  ;;  %v2001_v5 = vadd.f32 %v2000_v8, %v1999_v62 }
 0x465   : > { %v2127_v35 = vpop.f32.mrf.mxu0  ;;  %v2532_v41 = vrot.slane %v2531_v50, 2  ;;  %v2549_v46 = vadd.f32 %v2548_v30, %v2505_v58  ;;  %v2511_v44 = vadd.f32 %v2510_v43, %v2509_v4  ;;  %v2527_v37 = vadd.f32 %v2526_v63, %v2525_v61 }
 0x466   : > { %v2522_v49 = vrot.slane %v2521_v32, 1  ;;  %v2157_v12 = vsel %vm474_vm1, %v2149_v60, 0.0  ;;  %3503 = vrcp.f32 %v1983_v10  ;;  %v2542_v51 = vrot.slane %v2502_v6, 4 }
 0x467   : > { %v3286_v9 = vpop.f32.mrf.mxu0  ;;  %v2165_v17 = vrot.slane %v2164_v2, 4  ;;  %v2151_v53 = vmul.f32 %v4492_v1, %v2117_v23  ;;  %3505 = vrcp.f32 %v2007_v47  ;;  %v2517_v21 = vadd.f32 %v2516_v42, %v2515_v22 }
 0x468   : > { %v4501_v48 = vpop.eup %3495  ;;  %v2538_v52 = vrot.slane %v2537_v31, 2  ;;  %v2152_v38 = vmul.f32 %v3280_v29, %v4492_v1  ;;  %3507 = vrcp.f32 %v2001_v5  ;;  %v2533_v58 = vadd.f32 %v2532_v41, %v2531_v50  ;;  %v4511_v50 = vpop.permute.xlu1 %2686 }
 0x469   : > { %v2137_v33 = vpop.f32.mrf.mxu0  ;;  %v2550_v57 = vrot.slane %v2549_v46, 2  ;;  %v2158_v40 = vrot.slane %v2157_v12, 4  ;;  %3509 = vrcp.f32 %v2511_v44  ;;  %v2528_v16 = vrot.slane %v2527_v37, 1 }
 0x46a   : > { %v2523_v62 = vadd.f32 %v2522_v49, %v2521_v32  ;;  %v2543_v39 = vadd.f32 %v2542_v51, %v2502_v6  ;;  %v2166_v15 = vadd.f32 %v2165_v17, %v2164_v2  ;;  %v2171_v34 = vsel %vm474_vm1, %v2151_v53, 0.0 }
 0x46b   : > { %v3305_v13 = vpop.f32.mrf.mxu0  ;;  %v2154_v4 = vmul.f32 %v3283_v19, %v4492_v1  ;;  %3511 = vrcp.f32 %v2517_v21  ;;  %v2539_v26 = vadd.f32 %v2538_v52, %v2537_v31  ;;  %v2178_v29 = vsel %vm474_vm1, %v2152_v38, 0.0 }
 0x46c   : > { %v4506_v59 = vpop.eup %3497  ;;  %v2153_v18 = vmul.f32 %v4492_v1, %v2127_v35  ;;  %v2534_v27 = vrot.slane %v2533_v58, 1  ;;  %v2551_v23 = vadd.f32 %v2550_v57, %v2549_v46  ;;  %v2159_v14 = vadd.f32 %v2158_v40, %v2157_v12 }
 0x46d   : > { %v2647_v61 = vpop.f32.mrf.mxu0  ;;  %v2155_v22 = vmul.f32 %v4492_v1, %v2137_v33  ;;  %v2529_v28 = vadd.f32 %v2528_v16, %v2527_v37  ;;  %3513 = vrcp.f32 %v2523_v62  ;;  %v2172_v3 = vrot.slane %v2171_v34, 4 }
 0x46e   : > { %v2544_v8 = vrot.slane %v2543_v39, 2  ;;  %v2167_v30 = vrot.slane %v2166_v15, 2  ;;  %v2179_v19 = vrot.slane %v2178_v29, 4  ;;  %v2192_v43 = vsel %vm474_vm1, %v2154_v4, 0.0 }
 0x46f   : > { %v3308_v55 = vpop.f32.mrf.mxu0  ;;  %v2540_v32 = vrot.slane %v2539_v26, 1  ;;  %v2185_v60 = vsel %vm474_vm1, %v2153_v18, 0.0  ;;  %v2156_v10 = vmul.f32 %v3286_v9, %v4492_v1  ;;  %v2689_v35 = vmul.f32 %v4511_v50, %v2647_v61 }
 0x470   : > { %v4514_v63 = vpop.eup %3499  ;;  %v2535_v47 = vadd.f32 %v2534_v27, %v2533_v58  ;;  %v2552_v42 = vrot.slane %v2551_v23, 1  ;;  %v2160_v31 = vrot.slane %v2159_v14, 2  ;;  %v2199_v6 = vsel %vm474_vm1, %v2155_v22, 0.0 }
 0x471   : > { %v2657_v2 = vpop.f32.mrf.mxu0  ;;  %v4520_v5 = vpop.eup %3501  ;;  %3515 = vrcp.f32 %v2529_v28  ;;  %v2173_v41 = vadd.f32 %v2172_v3, %v2171_v34  ;;  %v2193_v46 = vrot.slane %v2192_v43, 4  ;;  %v2690_v44 = vmul.f32 %v3305_v13, %v4511_v50 }
 0x472   : > { %v2545_v37 = vadd.f32 %v2544_v8, %v2543_v39  ;;  %v2168_v49 = vadd.f32 %v2167_v30, %v2166_v15  ;;  %v2180_v12 = vadd.f32 %v2179_v19, %v2178_v29  ;;  %v2186_v51 = vrot.slane %v2185_v60, 4 }
 0x473   : > { %v4523_v1 = vpop.eup %3503  ;;  %v2206_v9 = vsel %vm474_vm1, %v2156_v10, 0.0  ;;  %v2200_v17 = vrot.slane %v2199_v6, 4  ;;  %v2697_v53 = vsel %vm474_vm1, %v2689_v35, 0.0  ;;  %v2691_v33 = vmul.f32 %v4511_v50, %v2657_v2  ;;  %v3311_v57 = vpop.f32.mrf.mxu0 }
 0x474   : > { %v4528_v21 = vpop.eup %3505  ;;  %v2541_v52 = vadd.f32 %v2540_v32, %v2539_v26  ;;  %3517 = vrcp.f32 %v2535_v47  ;;  %v2553_v38 = vadd.f32 %v2552_v42, %v2551_v23  ;;  %v2161_v58 = vadd.f32 %v2160_v31, %v2159_v14 }
 0x475   : > { %v4530_v40 = vpop.eup %3507  ;;  %v2174_v13 = vrot.slane %v2173_v41, 2  ;;  %v2194_v16 = vadd.f32 %v2193_v46, %v2192_v43  ;;  %v2704_v62 = vsel %vm474_vm1, %v2690_v44, 0.0  ;;  %v2711_v39 = vsel %vm474_vm1, %v2691_v33, 0.0  ;;  %v2667_v8 = vpop.f32.mrf.mxu0 }
 0x476   : > { %v4534_v15 = vpop.eup %3509  ;;  %v2187_v34 = vadd.f32 %v2186_v51, %v2185_v60  ;;  %v2207_v4 = vrot.slane %v2206_v9, 4  ;;  %v2698_v61 = vrot.slane %v2697_v53, 4  ;;  %v2692_v29 = vmul.f32 %v3308_v55, %v4511_v50 }
 0x477   : > { %v2546_v26 = vrot.slane %v2545_v37, 1  ;;  %v2169_v18 = vrot.slane %v2168_v49, 1  ;;  %v2181_v27 = vrot.slane %v2180_v12, 2  ;;  %v2201_v23 = vadd.f32 %v2200_v17, %v2199_v6  ;;  %v3314_v17 = vpop.f32.mrf.mxu0 }
 0x478   : > { %v4537_v14 = vpop.eup %3511  ;;  %3519 = vrcp.f32 %v2541_v52  ;;  %v2705_v22 = vrot.slane %v2704_v62, 4  ;;  %v2712_v28 = vrot.slane %v2711_v39, 4  ;;  %v2694_v3 = vmul.f32 %v3311_v57, %v4511_v50 }
 0x479   : > { %3521 = vrcp.f32 %v2553_v38  ;;  %v2162_v30 = vrot.slane %v2161_v58, 1  ;;  %v2175_v19 = vadd.f32 %v2174_v13, %v2173_v41  ;;  %v2195_v43 = vrot.slane %v2194_v16, 2 }
 0x47a   : > { %v4540_v32 = vpop.eup %3513  ;;  %v2188_v60 = vrot.slane %v2187_v34, 2  ;;  %v2208_v55 = vadd.f32 %v2207_v4, %v2206_v9  ;;  %v2699_v10 = vadd.f32 %v2698_v61, %v2697_v53  ;;  %v2718_v35 = vsel %vm474_vm1, %v2692_v29, 0.0 }
 0x47b   : > { %v2547_v47 = vadd.f32 %v2546_v26, %v2545_v37  ;;  %v2170_v42 = vadd.f32 %v2169_v18, %v2168_v49  ;;  %v2182_v31 = vadd.f32 %v2181_v27, %v2180_v12  ;;  %v2202_v6 = vrot.slane %v2201_v23, 2 }
 0x47c   : > { %v2706_v2 = vadd.f32 %v2705_v22, %v2704_v62  ;;  %v2713_v46 = vadd.f32 %v2712_v28, %v2711_v39  ;;  %v2732_v44 = vsel %vm474_vm1, %v2694_v3, 0.0  ;;  %v2693_v51 = vmul.f32 %v4511_v50, %v2667_v8 }
 0x47d   : > { %v2163_v41 = vadd.f32 %v2162_v30, %v2161_v58  ;;  %v2176_v33 = vrot.slane %v2175_v19, 1  ;;  %v2196_v52 = vadd.f32 %v2195_v43, %v2194_v16  ;;  %v2719_v38 = vrot.slane %v2718_v35, 4  ;;  %v2677_v58 = vpop.f32.mrf.mxu0 }
 0x47e   : > { %v4545_v57 = vpop.eup %3515  ;;  %v2189_v9 = vadd.f32 %v2188_v60, %v2187_v34  ;;  %v2209_v53 = vrot.slane %v2208_v55, 2  ;;  %v2700_v13 = vrot.slane %v2699_v10, 2  ;;  %v2725_v37 = vsel %vm474_vm1, %v2693_v51, 0.0 }
 0x47f   : > { %3523 = vrcp.f32 %v2547_v47  ;;  %v2222_v49 = vmul.f32 %v4475_v7, %v2170_v42  ;;  %v2203_v12 = vadd.f32 %v2202_v6, %v2201_v23  ;;  %v2733_v62 = vrot.slane %v2732_v44, 4 }
 0x480   : > { %v2183_v39 = vrot.slane %v2182_v31, 1  ;;  %v2707_v4 = vrot.slane %v2706_v2, 2  ;;  %v2714_v61 = vrot.slane %v2713_v46, 2  ;;  %v2726_v29 = vrot.slane %v2725_v37, 4 }
 0x481   : > { %v4549_v26 = vpop.eup %3517  ;;  %v2221_v16 = vmul.f32 %v4501_v48, %v2163_v41  ;;  %v2177_v18 = vadd.f32 %v2176_v33, %v2175_v19  ;;  %v2197_v34 = vrot.slane %v2196_v52, 1  ;;  %v2720_v27 = vadd.f32 %v2719_v38, %v2718_v35  ;;  %v2853_v41 = vld [vmem:[#allocation7 + $0x10] sm:$0xff] }
 0x482   : > { %v2190_v22 = vrot.slane %v2189_v9, 1  ;;  %v2210_v28 = vadd.f32 %v2209_v53, %v2208_v55  ;;  %v2701_v3 = vadd.f32 %v2700_v13, %v2699_v10  ;;  %v2727_v8 = vadd.f32 %v2726_v29, %v2725_v37  ;;  %v2854_v10 = vld [vmem:[#allocation7 + $0x18] sm:$0xff] }
 0x483   : > { %v2204_v30 = vrot.slane %v2203_v12, 1  ;;  %v2734_v7 = vadd.f32 %v2733_v62, %v2732_v44  ;;  %v2696_v23 = vmul.f32 %v3314_v17, %v4511_v50  ;;  %v2695_v43 = vmul.f32 %v4511_v50, %v2677_v58  ;;  %3316 = vmatpush3.msra.mxu1 %v2854_v10 }
 0x484   : > { %v2184_v60 = vadd.f32 %v2183_v39, %v2182_v31  ;;  %v2708_v47 = vadd.f32 %v2707_v4, %v2706_v2  ;;  %v2715_v42 = vadd.f32 %v2714_v61, %v2713_v46  ;;  %v2728_v6 = vrot.slane %v2727_v8, 2  ;;  %3317 = vmatprep.subr.mxu1 %v3698_v0 }
 0x485   : > { %v4554_v51 = vpop.eup %3519  ;;  %v2223_v48 = vmul.f32 %v4523_v1, %v2177_v18  ;;  %v2721_v19 = vrot.slane %v2720_v27, 2  ;;  %v2746_v35 = vsel %vm474_vm1, %v2696_v23, 0.0  ;;  %v2739_v55 = vsel %vm474_vm1, %v2695_v43, 0.0  ;;  %v2852_v1 = vld [vmem:[#allocation7 + $0x8] sm:$0xff]  ;;  %3318 = vmatpush3.msra.mxu1 %v2853_v41 }
 0x486   : > { %v4559_v44 = vpop.eup %3521  ;;  %v2198_v17 = vadd.f32 %v2197_v34, %v2196_v52  ;;  %v2191_v33 = vadd.f32 %v2190_v22, %v2189_v9  ;;  %v2702_v50 = vrot.slane %v2701_v3, 1  ;;  %v2747_v31 = vrot.slane %v2746_v35, 4  ;;  %3319 = vmatprep.subr.mxu1 %v3698_v0 }
 0x487   : > { %v2211_v2 = vrot.slane %v2210_v28, 1  ;;  %v2205_v46 = vadd.f32 %v2204_v30, %v2203_v12  ;;  %v2735_v38 = vrot.slane %v2734_v7, 2  ;;  %v2740_v53 = vrot.slane %v2739_v55, 4  ;;  %3320 = vmatpush3.msra.mxu1 %v2852_v1 }
 0x488   : > { %v2709_v13 = vrot.slane %v2708_v47, 1  ;;  %v2716_v37 = vrot.slane %v2715_v42, 1  ;;  %v2729_v62 = vadd.f32 %v2728_v6, %v2727_v8  ;;  %v2748_v39 = vadd.f32 %v2747_v31, %v2746_v35  ;;  %3321 = vmatprep.subr.mxu1 %v3698_v0  ;;  %v2851_v35 = vld [vmem:[#allocation7] sm:$0xff] }
 0x489   : > { %v2818_v4 = vsel %vm2777_vm3, %v2222_v49, %v2221_v16  ;;  %v2224_v52 = vmul.f32 %v4514_v63, %v2184_v60  ;;  %v2722_v9 = vadd.f32 %v2721_v19, %v2720_v27  ;;  %v2741_v61 = vadd.f32 %v2740_v53, %v2739_v55  ;;  %3322 = vmatpush3.msra.mxu1 %v2851_v35 }
 0x48a   : > { %v2819_v12 = vsel %vm2779_vm4, %v2223_v48, %v2818_v4  ;;  %v2225_v29 = vmul.f32 %v4506_v59, %v2191_v33  ;;  %v2703_v58 = vadd.f32 %v2702_v50, %v2701_v3  ;;  %v2749_v18 = vrot.slane %v2748_v39, 2 }
 0x48b   : > { %v2226_v34 = vmul.f32 %v4530_v40, %v2198_v17  ;;  %v2212_v22 = vadd.f32 %v2211_v2, %v2210_v28  ;;  %v2736_v8 = vadd.f32 %v2735_v38, %v2734_v7  ;;  %v2742_v30 = vrot.slane %v2741_v61, 2 }
 0x48c   : > { %v3524_v49 = vpop.eup %3523  ;;  %v2227_v63 = vmul.f32 %v4528_v21, %v2205_v46  ;;  %v2710_v16 = vadd.f32 %v2709_v13, %v2708_v47  ;;  %v2717_v27 = vadd.f32 %v2716_v37, %v2715_v42  ;;  %v2730_v23 = vrot.slane %v2729_v62, 1 }
 0x48d   : > { %v2723_v43 = vrot.slane %v2722_v9, 1  ;;  %v2750_v60 = vadd.f32 %v2749_v18, %v2748_v39  ;;  %v2743_v6 = vadd.f32 %v2742_v30, %v2741_v61  ;;  %v2820_v59 = vsel %vm2781_vm5, %v2224_v52, %v2819_v12 }
 0x48e   : > { %v2761_v3 = vmul.f32 %v4534_v15, %v2703_v58  ;;  %v2821_v40 = vsel %vm2783_vm6, %v2225_v29, %v2820_v59  ;;  %v2737_v28 = vrot.slane %v2736_v8, 1  ;;  %v2228_v48 = vmul.f32 %v4520_v5, %v2212_v22 }
 0x48f   : > { %v2744_v7 = vrot.slane %v2743_v6, 1  ;;  %v2822_v19 = vsel %vm2785_vm7, %v2226_v34, %v2821_v40  ;;  %v2763_v21 = vmul.f32 %v4540_v32, %v2717_v27  ;;  %v2731_v47 = vadd.f32 %v2730_v23, %v2729_v62 }
 0x490   : > { %v2823_v42 = vsel %vm2787_vm8, %v2227_v63, %v2822_v19  ;;  %v2762_v55 = vmul.f32 %v4537_v14, %v2710_v16  ;;  %v2724_v10 = vadd.f32 %v2723_v43, %v2722_v9  ;;  %v2751_v41 = vrot.slane %v2750_v60, 1 }
 0x491   : > { %v2824_v15 = vsel %vm2789_vm9, %v2228_v48, %v2823_v42  ;;  %v2745_v17 = vadd.f32 %v2744_v7, %v2743_v6  ;;  %v2738_v33 = vadd.f32 %v2737_v28, %v2736_v8  ;;  %v2765_v32 = vmul.f32 %v4549_v26, %v2731_v47 }
 0x492   : > { %2825 = vrot.lane.b32.xlu1 %v2824_v15, %s3711_s23  ;;  %v2836_v5 = vsel %vm2777_vm3, %v2762_v55, %v2761_v3  ;;  %v2764_v31 = vmul.f32 %v4545_v57, %v2724_v10  ;;  %v2752_v2 = vadd.f32 %v2751_v41, %v2750_v60  ;;  %v869_v57 = vpop.xlane.xlu0 %868 }
 0x493   : > { %v2837_v50 = vsel %vm2779_vm4, %v2763_v21, %v2836_v5  ;;  %v2767_v46 = vmul.f32 %v3524_v49, %v2745_v17  ;;  %v2766_v14 = vmul.f32 %v4554_v51, %v2738_v33  ;;  %v866_v51 = vpop.xlane.xlu1 %865  ;;  %v894_v61 = vrot.slane %v869_v57, 4 }
 0x494   : > { %v2838_v38 = vsel %vm2781_vm5, %v2764_v31, %v2837_v50  ;;  %v2768_v1 = vmul.f32 %v4559_v44, %v2752_v2  ;;  %v888_v4 = vrot.slane %v866_v51, 4 }
 0x495   : > { %v2839_v53 = vsel %vm2783_vm6, %v2765_v32, %v2838_v38  ;;  %v895_v58 = vadd.f32 %v894_v61, %v869_v57 }
 0x496   : > { %v2840_v13 = vsel %vm2785_vm7, %v2766_v14, %v2839_v53  ;;  %v872_v26 = vpop.xlane.xlu0 %871  ;;  %v889_v44 = vadd.f32 %v888_v4, %v866_v51 }
 0x497   : > { %v2841_v37 = vsel %vm2787_vm8, %v2767_v46, %v2840_v13  ;;  %v875_v52 = vpop.xlane.xlu1 %874  ;;  %v900_v12 = vrot.slane %v872_v26, 4  ;;  %v896_v63 = vrot.slane %v895_v58, 2 }
 0x498   : > { %v2842_v62 = vsel %vm2789_vm9, %v2768_v1, %v2841_v37  ;;  %v906_v18 = vrot.slane %v875_v52, 4  ;;  %v890_v22 = vrot.slane %v889_v44, 2 }
 0x499   : > { %2843 = vrot.lane.b32.xlu0 %v2842_v62, %s3709_s9  ;;  %v901_v8 = vadd.f32 %v900_v12, %v872_v26  ;;  %v897_v7 = vadd.f32 %v896_v63, %v895_v58  ;;  %s3627_s9 = scalar_lea.vmem %s3626_s16, 256 }
 0x49a   : > { %v878_v39 = vpop.xlane.xlu0 %877  ;;  %v907_v16 = vadd.f32 %v906_v18, %v875_v52  ;;  %v891_v23 = vadd.f32 %v890_v22, %v889_v44  ;;  %p3629_p12 = scmp.lt.s32.totalorder %s3627_s9, %s3621_s29 }
 0x49b   : > { %v881_v29 = vpop.xlane.xlu1 %880  ;;  %v912_v30 = vrot.slane %v878_v39, 4  ;;  %v902_v43 = vrot.slane %v901_v8, 2  ;;  %v898_v41 = vrot.slane %v897_v7, 1 }
 0x49c   : > { %v918_v27 = vrot.slane %v881_v29, 4  ;;  %v908_v48 = vrot.slane %v907_v16, 2  ;;  %v892_v35 = vrot.slane %v891_v23, 1  ;;  %p3630_p3 = por %p3629_p12, %p3628_p6 }
 0x49d   : > { %v913_v59 = vadd.f32 %v912_v30, %v878_v39  ;;  %v899_v1 = vadd.f32 %v898_v41, %v897_v7 }
 0x49e   : > { %v884_v9 = vpop.xlane.xlu0 %883  ;;  %v919_v19 = vadd.f32 %v918_v27, %v881_v29  ;;  %v909_v15 = vadd.f32 %v908_v48, %v907_v16  ;;  %v893_v33 = vadd.f32 %v892_v35, %v891_v23  ;;  %p3631_p9 = pnand %p3630_p3, %p3624_p2 }
 0x49f   : > { %v887_v60 = vpop.xlane.xlu1 %886  ;;  %v924_v3 = vrot.slane %v884_v9, 4  ;;  %v914_v10 = vrot.slane %v913_v59, 2 }
 0x4a0   : > { %v920_v17 = vrot.slane %v919_v19, 2  ;;  %v910_v13 = vrot.slane %v909_v15, 1  ;;  %3525 = vrcp.f32 %v893_v33 }
 0x4a1   : > { %3527 = vrcp.f32 %v899_v1 }
 0x4a2   : > { %v1066_v34 = vpop.permute.xlu0 %1065  ;;  %v921_v37 = vadd.f32 %v920_v17, %v919_v19  ;;  %v911_v12 = vadd.f32 %v910_v13, %v909_v15 }
 0x4a3   : > { %v1068_v49 = vmul.f32 %v1066_v34, %v4414_v54  ;;  %v1069_v0 = vmul.f32 %v4412_v45, %v1066_v34  ;;  %v1070_v6 = vmul.f32 %v1066_v34, %v4418_v56  ;;  %v930_v54 = vrot.slane %v887_v60, 4 }
 0x4a4   : > { %v903_v45 = vadd.f32 %v902_v43, %v901_v8  ;;  %v1071_v21 = vmul.f32 %v4416_v11, %v1066_v34  ;;  %v925_v56 = vadd.f32 %v924_v3, %v884_v9  ;;  %v1072_v31 = vmul.f32 %v1066_v34, %v4422_v36 }
 0x4a5   : > { %v1076_v40 = vsel %vm474_vm1, %v1068_v49, 0.0  ;;  %v1083_v28 = vsel %vm474_vm1, %v1069_v0, 0.0  ;;  %v1090_v55 = vsel %vm474_vm1, %v1070_v6, 0.0  ;;  %v931_v5 = vadd.f32 %v930_v54, %v887_v60 }
 0x4a6   : > { %v1077_v47 = vrot.slane %v1076_v40, 4  ;;  %v1084_v42 = vrot.slane %v1083_v28, 4  ;;  %v904_v50 = vrot.slane %v903_v45, 1  ;;  %v1091_v32 = vrot.slane %v1090_v55, 4 }
 0x4a7   : > { %v1097_v14 = vsel %vm474_vm1, %v1071_v21, 0.0  ;;  %v915_v11 = vadd.f32 %v914_v10, %v913_v59  ;;  %v926_v38 = vrot.slane %v925_v56, 2  ;;  %v1073_v53 = vmul.f32 %v4420_v25, %v1066_v34 }
 0x4a8   : > { %v1078_v2 = vadd.f32 %v1077_v47, %v1076_v40  ;;  %v1085_v46 = vadd.f32 %v1084_v42, %v1083_v28  ;;  %v932_v62 = vrot.slane %v931_v5, 2  ;;  %v905_v57 = vadd.f32 %v904_v50, %v903_v45 }
 0x4a9   : > { %v1092_v26 = vadd.f32 %v1091_v32, %v1090_v55  ;;  %v1098_v51 = vrot.slane %v1097_v14, 4  ;;  %v1104_v36 = vsel %vm474_vm1, %v1072_v31, 0.0  ;;  %v1074_v52 = vmul.f32 %v1066_v34, %v4426_v24 }
 0x4aa   : > { %v1079_v39 = vrot.slane %v1078_v2, 2  ;;  %v1086_v4 = vrot.slane %v1085_v46, 2  ;;  %v916_v9 = vrot.slane %v915_v11, 1  ;;  %v927_v61 = vadd.f32 %v926_v38, %v925_v56 }
 0x4ab   : > { %v1075_v44 = vmul.f32 %v4424_v20, %v1066_v34  ;;  %v1111_v25 = vsel %vm474_vm1, %v1073_v53, 0.0  ;;  %v922_v29 = vrot.slane %v921_v37, 1  ;;  %v933_v58 = vadd.f32 %v932_v62, %v931_v5 }
 0x4ac   : > { %3529 = vrcp.f32 %v905_v57  ;;  %v1093_v18 = vrot.slane %v1092_v26, 2  ;;  %v1099_v22 = vadd.f32 %v1098_v51, %v1097_v14  ;;  %v1105_v8 = vrot.slane %v1104_v36, 4 }
 0x4ad   : > { %v1080_v30 = vadd.f32 %v1079_v39, %v1078_v2  ;;  %v1087_v49 = vadd.f32 %v1086_v4, %v1085_v46  ;;  %v1112_v0 = vrot.slane %v1111_v25, 4  ;;  %v1118_v63 = vsel %vm474_vm1, %v1074_v52, 0.0  ;;  %v3526_v21 = vpop.eup %3525 }
 0x4ae   : > { %v917_v24 = vadd.f32 %v916_v9, %v915_v11  ;;  %v928_v16 = vrot.slane %v927_v61, 1  ;;  %v1125_v27 = vsel %vm474_vm1, %v1075_v44, 0.0  ;;  %3531 = vrcp.f32 %v911_v12  ;;  %v3528_v56 = vpop.eup %3527 }
 0x4af   : > { %v923_v20 = vadd.f32 %v922_v29, %v921_v37  ;;  %v934_v34 = vrot.slane %v933_v58, 1  ;;  %v1094_v23 = vadd.f32 %v1093_v18, %v1092_v26  ;;  %v1100_v43 = vrot.slane %v1099_v22, 2 }
 0x4b0   : > { %v1106_v60 = vadd.f32 %v1105_v8, %v1104_v36  ;;  %v1119_v6 = vrot.slane %v1118_v63, 4  ;;  %v1081_v59 = vrot.slane %v1080_v30, 1  ;;  %v1088_v3 = vrot.slane %v1087_v49, 1 }
 0x4b1   : > { %v1113_v40 = vadd.f32 %v1112_v0, %v1111_v25  ;;  %v1126_v28 = vrot.slane %v1125_v27, 4  ;;  %3533 = vrcp.f32 %v917_v24  ;;  %v929_v7 = vadd.f32 %v928_v16, %v927_v61 }
 0x4b2   : > { %3535 = vrcp.f32 %v923_v20  ;;  %v935_v48 = vadd.f32 %v934_v34, %v933_v58  ;;  %v1095_v19 = vrot.slane %v1094_v23, 1  ;;  %v1101_v54 = vadd.f32 %v1100_v43, %v1099_v22 }
 0x4b3   : > { %v1107_v35 = vrot.slane %v1106_v60, 2  ;;  %v1120_v45 = vadd.f32 %v1119_v6, %v1118_v63  ;;  %v1082_v47 = vadd.f32 %v1081_v59, %v1080_v30  ;;  %v1089_v42 = vadd.f32 %v1088_v3, %v1087_v49 }
 0x4b4   : > { %v1114_v55 = vrot.slane %v1113_v40, 2  ;;  %v1127_v10 = vadd.f32 %v1126_v28, %v1125_v27  ;;  %3537 = vrcp.f32 %v929_v7  ;;  %v1096_v41 = vadd.f32 %v1095_v19, %v1094_v23  ;;  %v3120_v23 = vld [vmem:[%s4669_s4] ss:$0 sm:$0xff] }
 0x4b5   : > { %3539 = vrcp.f32 %v935_v48  ;;  %v1102_v15 = vrot.slane %v1101_v54, 1  ;;  %v1108_v17 = vadd.f32 %v1107_v35, %v1106_v60  ;;  %v1121_v5 = vrot.slane %v1120_v45, 2 }
 0x4b6   : > { %v1115_v50 = vadd.f32 %v1114_v55, %v1113_v40  ;;  %v1128_v32 = vrot.slane %v1127_v10, 2  ;;  %v1140_v31 = vmul.f32 %v3526_v21, %v1082_v47  ;;  %v1141_v2 = vmul.f32 %v3528_v56, %v1089_v42 }
 0x4b7   : > { %v1109_v14 = vrot.slane %v1108_v17, 1  ;;  %v1122_v11 = vadd.f32 %v1121_v5, %v1120_v45  ;;  %v1103_v53 = vadd.f32 %v1102_v15, %v1101_v54 }
 0x4b8   : > { %v1116_v1 = vrot.slane %v1115_v50, 1  ;;  %v1129_v13 = vadd.f32 %v1128_v32, %v1127_v10  ;;  %v2778_v37 = vsel %vm2777_vm3, %v1141_v2, %v1140_v31 }
 0x4b9   : > { %v3530_v33 = vpop.eup %3529  ;;  %v1110_v51 = vadd.f32 %v1109_v14, %v1108_v17  ;;  %v1123_v39 = vrot.slane %v1122_v11, 1 }
 0x4ba   : > { %v1142_v38 = vmul.f32 %v3530_v33, %v1096_v41  ;;  %v1117_v36 = vadd.f32 %v1116_v1, %v1115_v50  ;;  %v1130_v52 = vrot.slane %v1129_v13, 1 }
 0x4bb   : > { %v3532_v46 = vpop.eup %3531  ;;  %v1124_v29 = vadd.f32 %v1123_v39, %v1122_v11 }
 0x4bc   : > { %v1143_v57 = vmul.f32 %v3532_v46, %v1103_v53  ;;  %v2780_v4 = vsel %vm2779_vm4, %v1142_v38, %v2778_v37  ;;  %v1131_v58 = vadd.f32 %v1130_v52, %v1129_v13 }
 0x4be   : > { %v3534_v62 = vpop.eup %3533  ;;  %v2782_v25 = vsel %vm2781_vm5, %v1143_v57, %v2780_v4 }
 0x4bf   : > { %v3536_v26 = vpop.eup %3535  ;;  %v1144_v9 = vmul.f32 %v3534_v62, %v1110_v51 }
 0x4c0   : > { %v1145_v44 = vmul.f32 %v3536_v26, %v1117_v36 }
 0x4c1   : > { %v3538_v61 = vpop.eup %3537  ;;  %v2784_v8 = vsel %vm2783_vm6, %v1144_v9, %v2782_v25 }
 0x4c2   : > { %v3540_v12 = vpop.eup %3539  ;;  %v1146_v22 = vmul.f32 %v3538_v61, %v1124_v29  ;;  %v2786_v49 = vsel %vm2785_vm7, %v1145_v44, %v2784_v8 }
 0x4c3   : > { %v1147_v30 = vmul.f32 %v3540_v12, %v1131_v58 }
 0x4c4   : > { %v2788_v0 = vsel %vm2787_vm8, %v1146_v22, %v2786_v49 }
 0x4c5   : > { %v2790_v24 = vsel %vm2789_vm9, %v1147_v30, %v2788_v0 }
 0x4d2   : > { %v2808_v18 = vpop.permute.xlu1 %2807 }
 0x4d3   : > { %v2846_v16 = vsel %vm474_vm1, %v2790_v24, %v2808_v18 }
 0x504   : > { %v2826_v63 = vpop.permute.xlu1 %2825 }
 0x505   : > { %v2848_v27 = vsel %vm2847_vm11, %v2846_v16, %v2826_v63 }
 0x50b   : > { %v2844_v20 = vpop.permute.xlu0 %2843 }
 0x50c   : > { %v2850_v34 = vsel %vm2849_vm12, %v2848_v27, %v2844_v20 }
 0x50d   : > { %3324 = vmatmul.mubr.msk.f32.vlgmr.msra.gmra.mxu1 %vm290_vm0, %v2850_v34 }
 0x5cd   : > { %v2931_v43 = vpop.f32.mrf.mxu1 }
 0x5ce   : > { %v2932_v60 = vadd.f32 %v3120_v23, %v2931_v43 }
 0x5cf   : > { %v3325_v6 = vpop.f32.mrf.mxu1 }
 0x5d0   : > { %2935 = vst.msk [vmem:[%s268_s12] sm:$0xff] %vm290_vm0, %v2932_v60 }
 0x5d1   : > { %3634 = shalt.err (!%p3631_p9)
}
 0x5d2   : > { %s3635_s11 = scalar_lea.hbm %s4627_s7, 128  ;;  %s3639_s27 = scalar_lea.hbm %s4670_s5, 256 }
 0x5d3   : > { %p3636_p13 = scmp.ne.s32.totalorder %s4627_s7, %s3635_s11  ;;  %p3640_p4 = scmp.lt.s32.totalorder %s4627_s7, %s4670_s5 }
 0x5d4   : > { %p3641_p8 = scmp.lt.s32.totalorder %s3639_s27, %s3635_s11 }
 0x5d5   : > { %p3637_p5 = pnand %p3636_p13, %p4686_p0 }
 0x5d6   : > { %p3642_p7 = por %p3641_p8, %p3640_p4 }
 0x5d7   : > { %p3638_p10 = pneg %p3637_p5 }
 0x5d9   : > { %p3643_p11 = pnand %p3642_p7, %p3638_p10 }
 0x5db   : > { %3646 = shalt.err (!%p3643_p11)
}
 0x5dc   : > { %3336 = dma.vmem_to_hbm [thread:$0]  (%p4686_p0), %s2951_s13, 128, %s4627_s7, %s2937_s8  }
 0x5dd PF: > { %s2962_s10 = sand.u32 1, %s3677_s18   ;;  %p4687_p1 = scmp.ne.s32.totalorder %s4676_s25, 0 }
 0x5de   : > { %p4688_p2 = scmp.ge.s32.totalorder %s3689_s21, 2  ;;  %s2963_s12 = scalar_lea.sflag [#allocation4], %s2962_s10 }
 0x5e0   : > { %p3350_p6 = pnand %p4688_p2, %p4687_p1 }
 0x5e2   : > { %p3351_p12 = pneg %p3350_p6 }
 0x5e4   : > { %3672 = dma.done.wait (%p3351_p12), %s2963_s12, 128  }
 0x5e5   : > { %3674 = vsyncadd (%p3351_p12), %s2963_s12, 4294967168  ;;  %p19_p3 = scmp.ge.s32.totalorder %s3817_s17, 4   ;;  %s4689_s18 = smov %s3681_s19 }
 0x5e6   : > { %s4690_s19 = smov %s3685_s20  ;;  %s4691_s20 = smov %s3826_s28 }
 0x5e7   : > { %s4692_s21 = smov %s3817_s17  ;;  %21 = sbr.rel (!%p19_p3) target bundleno = 6 (0x6), region = 93 }
 0x5ec   :  { %2968 = vsyncpa [#allocation3], 1 }
 0x5ed   :  { %2970 = vsyncpa [#allocation3 + $0x1], 1 }
 0x5ee   :  { %2971 = vsyncpa [#allocation6], 1 }
 0x5ef   :  { %2972 = vsyncpa [#allocation4], 1 }
 0x5f0   :  { %2974 = vsyncpa [#allocation4 + $0x1], 1 }

</bundles_post_ra>
